<compile_context>
chip_gen: v5e
topology: v5e:2x2
jax: 0.10.0
libtpu: 0.0.40
codegen_flags: <defaults>
</compile_context>

<pallas_src>
import functools
import math

import jax
import jax.numpy as jnp
from jax.experimental import pallas as pl
from jax.experimental.pallas import tpu as pltpu


# ---------------------------------------------------------------------------
# Pallas kernel: encoder (all layers) + mean-pool + task head
# ---------------------------------------------------------------------------

def _encoder_head_kernel(x_ref, elnw_ref, elnb_ref,
                         wqkv_ref, bqkv_ref, wo_ref, bo_ref, ln1w_ref, ln1b_ref,
                         w1_ref, b1_ref, w2_ref, b2_ref, ln2w_ref, ln2b_ref,
                         headw_ref, headb_ref,
                         logits_ref,
                         act_ref, ctx_ref, qkv_ref,
                         *, batch, seq, num_heads, head_dim, hidden, eps):
    """grid = (num_layers,); activations live in VMEM across layer steps."""
    l = pl.program_id(0)
    B, S, H = batch, seq, hidden

    def layer_norm(v, w, b):
        mu = jnp.mean(v, axis=-1, keepdims=True)
        var = jnp.mean((v - mu) ** 2, axis=-1, keepdims=True)
        return (v - mu) * jax.lax.rsqrt(var + eps) * w + b

    # First layer step: embedding LayerNorm fused here (no standalone kernel).
    @pl.when(l == 0)
    def _():
        act_ref[...] = layer_norm(x_ref[...].astype(jnp.float32),
                                  elnw_ref[...], elnb_ref[...])

    x = act_ref[...]                                   # (B*S, H) f32
    xb = x.astype(jnp.bfloat16)

    # --- fused QKV projection: one (H, 3H) bf16 MXU matmul over B*S tokens ---
    qkv_ref[...] = (jnp.dot(xb, wqkv_ref[0], preferred_element_type=jnp.float32)
                    + bqkv_ref[0])                     # (B*S, 3H) f32

    # --- multi-head self attention (no padding => no attention mask) ---
    # Loop over batch rows with fori_loop so the per-row head unroll stays a
    # small basic block; ctx stores are full-lane-width (lane-dense).
    scale = 1.0 / math.sqrt(head_dim)

    def attend(b, carry):
        row0 = pl.multiple_of(b * S, S)
        qkv_b = qkv_ref[pl.ds(row0, S), :]             # (S, 3H) f32
        chs = []
        for h in range(num_heads):                     # static, small unroll
            lo = h * head_dim
            # 1/sqrt(hd) folded into q (S*hd mults instead of S*S).
            qh = (qkv_b[:, lo:lo + head_dim] * scale).astype(jnp.bfloat16)
            kh = qkv_b[:, H + lo:H + lo + head_dim].astype(jnp.bfloat16)
            vh = qkv_b[:, 2 * H + lo:2 * H + lo + head_dim].astype(jnp.bfloat16)
            # q @ k^T without materializing a transpose (NT dot_general).
            s = jax.lax.dot_general(qh, kh, (((1,), (1,)), ((), ())),
                                    preferred_element_type=jnp.float32)
            s = s - jnp.max(s, axis=-1, keepdims=True)
            p = jnp.exp(s)
            p = p * pl.reciprocal(jnp.sum(p, axis=-1, keepdims=True),
                                  approx=True)
            chs.append(jax.lax.dot_general(p.astype(jnp.bfloat16), vh,
                                           (((1,), (0,)), ((), ())),
                                           preferred_element_type=jnp.float32))
        # single full-width store of this row's context (unmasked vst).
        ctx_ref[pl.ds(row0, S), :] = jnp.concatenate(chs, axis=-1)
        return carry

    jax.lax.fori_loop(0, B, attend, 0)

    ctx = ctx_ref[...].astype(jnp.bfloat16)            # (B*S, H)
    sa = jnp.dot(ctx, wo_ref[0], preferred_element_type=jnp.float32) + bo_ref[0]
    x1 = layer_norm(x + sa, ln1w_ref[0], ln1b_ref[0])  # post-LN

    # --- feed-forward (bf16 matmuls, f32 accumulate) ---
    # TODO(synk): HF DistilBERT uses exact erf-GELU; tanh approximation here.
    h1 = jax.nn.gelu(jnp.dot(x1.astype(jnp.bfloat16), w1_ref[0],
                             preferred_element_type=jnp.float32) + b1_ref[0],
                     approximate=True)
    ffn = (jnp.dot(h1.astype(jnp.bfloat16), w2_ref[0],
                   preferred_element_type=jnp.float32) + b2_ref[0])
    x2 = layer_norm(x1 + ffn, ln2w_ref[0], ln2b_ref[0])

    act_ref[...] = x2                                  # carry to next layer

    @pl.when(l == pl.num_programs(0) - 1)
    def _():
        # fused mean-pool over seq + task head: only (B, Cp) logits hit HBM.
        rows = [jnp.mean(x2[b * S:(b + 1) * S, :], axis=0, keepdims=True)
                for b in range(B)]
        pooled = jnp.concatenate(rows, axis=0)         # (B, H) f32
        logits_ref[...] = (jnp.dot(pooled, headw_ref[...],
                                   preferred_element_type=jnp.float32)
                           + headb_ref[...]).astype(logits_ref.dtype)


# ---------------------------------------------------------------------------
# Wrapper around pallas_call
# ---------------------------------------------------------------------------

_LAYER_KEYS = ("wqkv", "bqkv", "wo", "bo", "ln1w", "ln1b",
               "w1", "b1", "w2", "b2", "ln2w", "ln2b")


def encoder_and_head(x_flat, params, head_w, head_b, *,
                     batch, seq, num_heads, head_dim, eps=1e-12):
    """x_flat: (B*S, H) embeddings; head_w: (H, Cp); head_b: (1, Cp)."""
    BS, H = x_flat.shape
    stacked = [params[k] for k in _LAYER_KEYS]
    L = stacked[0].shape[0]
    Cp = head_w.shape[1]

    def layer_spec(a):                                  # all layer params 3-D
        return pl.BlockSpec((1,) + a.shape[1:], lambda l: (l, 0, 0))

    def const_spec(a):
        zeros = (0,) * a.ndim
        return pl.BlockSpec(a.shape, lambda l: zeros)

    kernel = functools.partial(_encoder_head_kernel, batch=batch, seq=seq,
                               num_heads=num_heads, head_dim=head_dim,
                               hidden=H, eps=eps)
    return pl.pallas_call(
        kernel,
        out_shape=jax.ShapeDtypeStruct((batch, Cp), jnp.float32),
        grid=(L,),
        in_specs=[const_spec(x_flat),
                  const_spec(params["emb_lnw"]), const_spec(params["emb_lnb"])]
                 + [layer_spec(a) for a in stacked]
                 + [const_spec(head_w), const_spec(head_b)],
        out_specs=pl.BlockSpec((batch, Cp), lambda l: (0, 0)),
        scratch_shapes=[pltpu.VMEM((BS, H), jnp.float32),       # activation carry
                        pltpu.VMEM((BS, H), jnp.float32),       # attention context
                        pltpu.VMEM((BS, 3 * H), jnp.float32)],  # fused QKV
        compiler_params=pltpu.CompilerParams(
            dimension_semantics=("arbitrary",),            # layer axis is sequential
            vmem_limit_bytes=48 * 1024 * 1024),             # < 64 MiB v7x physical
    )(x_flat, params["emb_lnw"], params["emb_lnb"], *stacked, head_w, head_b)


# ---------------------------------------------------------------------------
# Model: parameters + forward
# ---------------------------------------------------------------------------

def init_params(key, *, vocab_size, max_pos, hidden, ffn, num_layers,
                n_classification, n_sentiment):
    std = 0.02
    keys = iter(jax.random.split(key, 4 + 6 * num_layers))

    def nrm(shape):
        return jax.random.normal(next(keys), shape, jnp.float32) * std

    params = {
        "word_emb": nrm((vocab_size, hidden)),
        "pos_emb": nrm((max_pos, hidden)),
        "emb_lnw": jnp.ones((1, hidden), jnp.float32),
        "emb_lnb": jnp.zeros((1, hidden), jnp.float32),
    }

    wqkv, wo, w1, w2 = [], [], [], []
    for _ in range(num_layers):
        wq, wk, wv = nrm((hidden, hidden)), nrm((hidden, hidden)), nrm((hidden, hidden))
        wqkv.append(jnp.concatenate([wq, wk, wv], axis=1))      # fused (H, 3H)
        wo.append(nrm((hidden, hidden)))
        w1.append(nrm((hidden, ffn)))
        w2.append(nrm((ffn, hidden)))

    L = num_layers
    params.update({
        # matmul weights stored in bf16 (MXU fast path); biases / LN in f32.
        "wqkv": jnp.stack(wqkv).astype(jnp.bfloat16),           # (L, H, 3H)
        "bqkv": jnp.zeros((L, 1, 3 * hidden), jnp.float32),
        "wo":   jnp.stack(wo).astype(jnp.bfloat16),             # (L, H, H)
        "bo":   jnp.zeros((L, 1, hidden), jnp.float32),
        "ln1w": jnp.ones((L, 1, hidden), jnp.float32),
        "ln1b": jnp.zeros((L, 1, hidden), jnp.float32),
        "w1":   jnp.stack(w1).astype(jnp.bfloat16),             # (L, H, F)
        "b1":   jnp.zeros((L, 1, ffn), jnp.float32),
        "w2":   jnp.stack(w2).astype(jnp.bfloat16),             # (L, F, H)
        "b2":   jnp.zeros((L, 1, hidden), jnp.float32),
        "ln2w": jnp.ones((L, 1, hidden), jnp.float32),
        "ln2b": jnp.zeros((L, 1, hidden), jnp.float32),
        # task heads, stored as (H, C) so kernel does pooled @ W + b
        "cls_w": nrm((hidden, n_classification)),
        "cls_b": jnp.zeros((1, n_classification), jnp.float32),
        "sent_w": nrm((hidden, n_sentiment)),
        "sent_b": jnp.zeros((1, n_sentiment), jnp.float32),
    })
    return params


def multi_task_distilbert(params, input_ids, task, *, num_heads):
    B, S = input_ids.shape
    hidden = params["word_emb"].shape[1]
    head_dim = hidden // num_heads

    # embeddings (gather is glue in plain JAX); embedding LN, encoder layers,
    # mean-pool and the task head all run inside the single Pallas kernel.
    we = params["word_emb"][input_ids]                          # (B, S, H)
    pe = params["pos_emb"][jnp.arange(S)][None, :, :]           # (1, S, H)
    x_flat = (we + pe).reshape(B * S, hidden)

    if task == "classification":
        w, b = params["cls_w"], params["cls_b"]
    elif task == "sentiment":
        w, b = params["sent_w"], params["sent_b"]
    else:
        raise ValueError(f"unknown task: {task}")

    C = w.shape[1]
    Cp = max(128, -(-C // 128) * 128)                           # 128-lane pad
    w_p = jnp.zeros((hidden, Cp), jnp.float32).at[:, :C].set(w)
    b_p = jnp.zeros((1, Cp), jnp.float32).at[:, :C].set(b)

    logits = encoder_and_head(x_flat, params, w_p, b_p, batch=B, seq=S,
                              num_heads=num_heads, head_dim=head_dim)
    return logits[:, :C]


# ---------------------------------------------------------------------------
# Demo
# ---------------------------------------------------------------------------

if __name__ == "__main__":
    B, S = 2, 8
    HIDDEN, HEADS, FFN, LAYERS = 32, 4, 64, 2
    VOCAB, MAX_POS = 100, 16

    key = jax.random.PRNGKey(0)
    pkey, dkey = jax.random.split(key)
    params = init_params(pkey, vocab_size=VOCAB, max_pos=MAX_POS,
                         hidden=HIDDEN, ffn=FFN, num_layers=LAYERS,
                         n_classification=4, n_sentiment=3)
    input_ids = jax.random.randint(dkey, (B, S), 0, VOCAB, dtype=jnp.int32)

    out_cls = multi_task_distilbert(params, input_ids, "classification",
                                    num_heads=HEADS)
    out_sent = multi_task_distilbert(params, input_ids, "sentiment",
                                     num_heads=HEADS)
    jax.block_until_ready(out_cls)
    jax.block_until_ready(out_sent)

    assert out_cls.shape == (B, 4), out_cls.shape
    assert out_sent.shape == (B, 3), out_sent.shape
    assert jnp.all(jnp.isfinite(out_cls)) and jnp.all(jnp.isfinite(out_sent))
    print("KERNEL_OK")
</pallas_src>

<mosaic_0001>
module attributes {stable_mosaic.version = 11 : i64} {
  func.func @_encoder_head_kernel(%arg0: i32, %arg1: memref<16x32xf32, #tpu.memory_space<vmem>>, %arg2: memref<1x32xf32, #tpu.memory_space<vmem>>, %arg3: memref<1x32xf32, #tpu.memory_space<vmem>>, %arg4: memref<1x32x96xbf16, #tpu.memory_space<vmem>>, %arg5: memref<1x1x96xf32, #tpu.memory_space<vmem>>, %arg6: memref<1x32x32xbf16, #tpu.memory_space<vmem>>, %arg7: memref<1x1x32xf32, #tpu.memory_space<vmem>>, %arg8: memref<1x1x32xf32, #tpu.memory_space<vmem>>, %arg9: memref<1x1x32xf32, #tpu.memory_space<vmem>>, %arg10: memref<1x32x64xbf16, #tpu.memory_space<vmem>>, %arg11: memref<1x1x64xf32, #tpu.memory_space<vmem>>, %arg12: memref<1x64x32xbf16, #tpu.memory_space<vmem>>, %arg13: memref<1x1x32xf32, #tpu.memory_space<vmem>>, %arg14: memref<1x1x32xf32, #tpu.memory_space<vmem>>, %arg15: memref<1x1x32xf32, #tpu.memory_space<vmem>>, %arg16: memref<32x128xf32, #tpu.memory_space<vmem>>, %arg17: memref<1x128xf32, #tpu.memory_space<vmem>>, %arg18: memref<2x128xf32, #tpu.memory_space<vmem>>, %arg19: memref<16x32xf32, #tpu.memory_space<vmem>>, %arg20: memref<16x32xf32, #tpu.memory_space<vmem>>, %arg21: memref<16x96xf32, #tpu.memory_space<vmem>>) attributes {dimension_semantics = [#tpu.dimension_semantics<arbitrary>], iteration_bounds = array<i64: 2>, scalar_prefetch = 0 : i64, scratch_operands = 3 : i64, tpu.core_type = #tpu.core_type<tc>, window_params = [{pipeline_mode = #tpu.pipeline_mode<synchronous>, transform_indices = @transform_0, window_bounds = array<i64: 16, 32>}, {pipeline_mode = #tpu.pipeline_mode<synchronous>, transform_indices = @transform_1, window_bounds = array<i64: 1, 32>}, {pipeline_mode = #tpu.pipeline_mode<synchronous>, transform_indices = @transform_2, window_bounds = array<i64: 1, 32>}, {transform_indices = @transform_3, window_bounds = array<i64: 1, 32, 96>}, {transform_indices = @transform_4, window_bounds = array<i64: 1, 1, 96>}, {transform_indices = @transform_5, window_bounds = array<i64: 1, 32, 32>}, {transform_indices = @transform_6, window_bounds = array<i64: 1, 1, 32>}, {transform_indices = @transform_7, window_bounds = array<i64: 1, 1, 32>}, {transform_indices = @transform_8, window_bounds = array<i64: 1, 1, 32>}, {transform_indices = @transform_9, window_bounds = array<i64: 1, 32, 64>}, {transform_indices = @transform_10, window_bounds = array<i64: 1, 1, 64>}, {transform_indices = @transform_11, window_bounds = array<i64: 1, 64, 32>}, {transform_indices = @transform_12, window_bounds = array<i64: 1, 1, 32>}, {transform_indices = @transform_13, window_bounds = array<i64: 1, 1, 32>}, {transform_indices = @transform_14, window_bounds = array<i64: 1, 1, 32>}, {pipeline_mode = #tpu.pipeline_mode<synchronous>, transform_indices = @transform_15, window_bounds = array<i64: 32, 128>}, {pipeline_mode = #tpu.pipeline_mode<synchronous>, transform_indices = @transform_16, window_bounds = array<i64: 1, 128>}, {pipeline_mode = #tpu.pipeline_mode<synchronous>, transform_indices = @transform_17, window_bounds = array<i64: 2, 128>}]} {
    %c0_i32 = arith.constant 0 : i32
    %0 = arith.cmpi eq, %arg0, %c0_i32 : i32
    %1 = arith.extui %0 : i1 to i32
    %c0_i32_0 = arith.constant 0 : i32
    %2 = arith.cmpi ne, %1, %c0_i32_0 : i32
    scf.if %2 {
      %c0_65 = arith.constant 0 : index
      %c0_66 = arith.constant 0 : index
      %110 = vector.load %arg1[%c0_65, %c0_66] : memref<16x32xf32, #tpu.memory_space<vmem>>, vector<16x32xf32>
      %c0_67 = arith.constant 0 : index
      %c0_68 = arith.constant 0 : index
      %111 = vector.load %arg2[%c0_67, %c0_68] : memref<1x32xf32, #tpu.memory_space<vmem>>, vector<1x32xf32>
      %c0_69 = arith.constant 0 : index
      %c0_70 = arith.constant 0 : index
      %112 = vector.load %arg3[%c0_69, %c0_70] : memref<1x32xf32, #tpu.memory_space<vmem>>, vector<1x32xf32>
      %cst_71 = arith.constant dense<0.000000e+00> : vector<16xf32>
      %113 = vector.multi_reduction <add>, %110, %cst_71 [1] : vector<16x32xf32> to vector<16xf32>
      %114 = vector.shape_cast %113 : vector<16xf32> to vector<16x1xf32>
      %cst_72 = arith.constant 3.200000e+01 : f32
      %115 = vector.broadcast %cst_72 : f32 to vector<16x1xf32>
      %116 = arith.divf %114, %115 : vector<16x1xf32>
      %117 = vector.broadcast %116 : vector<16x1xf32> to vector<16x32xf32>
      %118 = arith.subf %110, %117 : vector<16x32xf32>
      %119 = arith.mulf %118, %118 : vector<16x32xf32>
      %cst_73 = arith.constant dense<0.000000e+00> : vector<16xf32>
      %120 = vector.multi_reduction <add>, %119, %cst_73 [1] : vector<16x32xf32> to vector<16xf32>
      %121 = vector.shape_cast %120 : vector<16xf32> to vector<16x1xf32>
      %cst_74 = arith.constant 3.200000e+01 : f32
      %122 = vector.broadcast %cst_74 : f32 to vector<16x1xf32>
      %123 = arith.divf %121, %122 : vector<16x1xf32>
      %124 = vector.broadcast %116 : vector<16x1xf32> to vector<16x32xf32>
      %125 = arith.subf %110, %124 : vector<16x32xf32>
      %cst_75 = arith.constant 9.99999996E-13 : f32
      %126 = vector.broadcast %cst_75 : f32 to vector<16x1xf32>
      %127 = arith.addf %123, %126 : vector<16x1xf32>
      %128 = math.rsqrt %127 : vector<16x1xf32>
      %129 = vector.broadcast %128 : vector<16x1xf32> to vector<16x32xf32>
      %130 = arith.mulf %125, %129 : vector<16x32xf32>
      %131 = vector.broadcast %111 : vector<1x32xf32> to vector<16x32xf32>
      %132 = arith.mulf %130, %131 : vector<16x32xf32>
      %133 = vector.broadcast %112 : vector<1x32xf32> to vector<16x32xf32>
      %134 = arith.addf %132, %133 : vector<16x32xf32>
      %c0_76 = arith.constant 0 : index
      %c0_77 = arith.constant 0 : index
      %135 = vector.load %arg19[%c0_76, %c0_77] : memref<16x32xf32, #tpu.memory_space<vmem>>, vector<16x32xf32>
      tpu.vector_store %arg19[%c0_76, %c0_77], %134 {strides = array<i32>} : memref<16x32xf32, #tpu.memory_space<vmem>>, vector<16x32xf32>,
    } else {
    }
    %c0 = arith.constant 0 : index
    %c0_1 = arith.constant 0 : index
    %3 = vector.load %arg19[%c0, %c0_1] : memref<16x32xf32, #tpu.memory_space<vmem>>, vector<16x32xf32>
    %4 = arith.truncf %3 : vector<16x32xf32> to vector<16x32xbf16>
    %c0_2 = arith.constant 0 : index
    %c0_3 = arith.constant 0 : index
    %c0_4 = arith.constant 0 : index
    %5 = vector.load %arg4[%c0_2, %c0_3, %c0_4] : memref<1x32x96xbf16, #tpu.memory_space<vmem>>, vector<1x32x96xbf16>
    %6 = vector.shape_cast %5 : vector<1x32x96xbf16> to vector<32x96xbf16>
    %cst = arith.constant dense<0.000000e+00> : vector<16x96xf32>
    %7 = tpu.matmul %4, %6, %cst {dimension_numbers = #tpu.dot_dimension_numbers<[1], [0], [0], [1], [0, 0, 1, 1], [], []>} : vector<16x32xbf16>, vector<32x96xbf16>, vector<16x96xf32> -> vector<16x96xf32>
    %c0_5 = arith.constant 0 : index
    %c0_6 = arith.constant 0 : index
    %c0_7 = arith.constant 0 : index
    %8 = vector.load %arg5[%c0_5, %c0_6, %c0_7] : memref<1x1x96xf32, #tpu.memory_space<vmem>>, vector<1x1x96xf32>
    %9 = vector.shape_cast %8 : vector<1x1x96xf32> to vector<1x96xf32>
    %10 = vector.broadcast %9 : vector<1x96xf32> to vector<16x96xf32>
    %11 = arith.addf %7, %10 : vector<16x96xf32>
    %c0_8 = arith.constant 0 : index
    %c0_9 = arith.constant 0 : index
    %12 = vector.load %arg21[%c0_8, %c0_9] : memref<16x96xf32, #tpu.memory_space<vmem>>, vector<16x96xf32>
    tpu.vector_store %arg21[%c0_8, %c0_9], %11 {strides = array<i32>} : memref<16x96xf32, #tpu.memory_space<vmem>>, vector<16x96xf32>,
    %c0_i32_10 = arith.constant 0 : i32
    %c2_i32 = arith.constant 2 : i32
    %13 = arith.addi %c0_i32_10, %c2_i32 : i32
    %c1_i32 = arith.constant 1 : i32
    scf.for %arg22 = %c0_i32_10 to %13 step %c1_i32  : i32 {
      %c8_i32 = arith.constant 8 : i32
      %110 = arith.muli %arg22, %c8_i32 : i32
      %111 = tpu.assume_multiple %110, 8 : i32
      %112 = arith.index_cast %111 : i32 to index
      %c0_65 = arith.constant 0 : index
      %113 = vector.load %arg21[%112, %c0_65] : memref<16x96xf32, #tpu.memory_space<vmem>>, vector<8x96xf32>
      %114 = vector.extract_strided_slice %113 {offsets = [0, 0], sizes = [8, 8], strides = [1, 1]} : vector<8x96xf32> to vector<8x8xf32>
      %cst_66 = arith.constant 0.353553385 : f32
      %115 = vector.broadcast %cst_66 : f32 to vector<8x8xf32>
      %116 = arith.mulf %114, %115 : vector<8x8xf32>
      %117 = arith.truncf %116 : vector<8x8xf32> to vector<8x8xbf16>
      %118 = vector.extract_strided_slice %113 {offsets = [0, 32], sizes = [8, 8], strides = [1, 1]} : vector<8x96xf32> to vector<8x8xf32>
      %119 = arith.truncf %118 : vector<8x8xf32> to vector<8x8xbf16>
      %120 = vector.extract_strided_slice %113 {offsets = [0, 64], sizes = [8, 8], strides = [1, 1]} : vector<8x96xf32> to vector<8x8xf32>
      %121 = arith.truncf %120 : vector<8x8xf32> to vector<8x8xbf16>
      %cst_67 = arith.constant dense<0.000000e+00> : vector<8x8xf32>
      %122 = tpu.matmul %117, %119, %cst_67 {dimension_numbers = #tpu.dot_dimension_numbers<[1], [1], [0], [0], [0, 0, 1, 0], [], []>} : vector<8x8xbf16>, vector<8x8xbf16>, vector<8x8xf32> -> vector<8x8xf32>
      %cst_68 = arith.constant dense<0xFF800000> : vector<8xf32>
      %123 = vector.multi_reduction <maximumf>, %122, %cst_68 [1] : vector<8x8xf32> to vector<8xf32>
      %124 = vector.shape_cast %123 : vector<8xf32> to vector<8x1xf32>
      %125 = vector.broadcast %124 : vector<8x1xf32> to vector<8x8xf32>
      %126 = arith.subf %122, %125 : vector<8x8xf32>
      %127 = math.exp %126 : vector<8x8xf32>
      %cst_69 = arith.constant dense<0.000000e+00> : vector<8xf32>
      %128 = vector.multi_reduction <add>, %127, %cst_69 [1] : vector<8x8xf32> to vector<8xf32>
      %129 = vector.shape_cast %128 : vector<8xf32> to vector<8x1xf32>
      %130 = tpu.reciprocal %129 {approx = true} : vector<8x1xf32> -> vector<8x1xf32>
      %131 = vector.broadcast %130 : vector<8x1xf32> to vector<8x8xf32>
      %132 = arith.mulf %127, %131 : vector<8x8xf32>
      %133 = arith.truncf %132 : vector<8x8xf32> to vector<8x8xbf16>
      %cst_70 = arith.constant dense<0.000000e+00> : vector<8x8xf32>
      %134 = tpu.matmul %133, %121, %cst_70 {dimension_numbers = #tpu.dot_dimension_numbers<[1], [0], [0], [1], [0, 0, 1, 1], [], []>} : vector<8x8xbf16>, vector<8x8xbf16>, vector<8x8xf32> -> vector<8x8xf32>
      %135 = vector.extract_strided_slice %113 {offsets = [0, 8], sizes = [8, 8], strides = [1, 1]} : vector<8x96xf32> to vector<8x8xf32>
      %cst_71 = arith.constant 0.353553385 : f32
      %136 = vector.broadcast %cst_71 : f32 to vector<8x8xf32>
      %137 = arith.mulf %135, %136 : vector<8x8xf32>
      %138 = arith.truncf %137 : vector<8x8xf32> to vector<8x8xbf16>
      %139 = vector.extract_strided_slice %113 {offsets = [0, 40], sizes = [8, 8], strides = [1, 1]} : vector<8x96xf32> to vector<8x8xf32>
      %140 = arith.truncf %139 : vector<8x8xf32> to vector<8x8xbf16>
      %141 = vector.extract_strided_slice %113 {offsets = [0, 72], sizes = [8, 8], strides = [1, 1]} : vector<8x96xf32> to vector<8x8xf32>
      %142 = arith.truncf %141 : vector<8x8xf32> to vector<8x8xbf16>
      %cst_72 = arith.constant dense<0.000000e+00> : vector<8x8xf32>
      %143 = tpu.matmul %138, %140, %cst_72 {dimension_numbers = #tpu.dot_dimension_numbers<[1], [1], [0], [0], [0, 0, 1, 0], [], []>} : vector<8x8xbf16>, vector<8x8xbf16>, vector<8x8xf32> -> vector<8x8xf32>
      %cst_73 = arith.constant dense<0xFF800000> : vector<8xf32>
      %144 = vector.multi_reduction <maximumf>, %143, %cst_73 [1] : vector<8x8xf32> to vector<8xf32>
      %145 = vector.shape_cast %144 : vector<8xf32> to vector<8x1xf32>
      %146 = vector.broadcast %145 : vector<8x1xf32> to vector<8x8xf32>
      %147 = arith.subf %143, %146 : vector<8x8xf32>
      %148 = math.exp %147 : vector<8x8xf32>
      %cst_74 = arith.constant dense<0.000000e+00> : vector<8xf32>
      %149 = vector.multi_reduction <add>, %148, %cst_74 [1] : vector<8x8xf32> to vector<8xf32>
      %150 = vector.shape_cast %149 : vector<8xf32> to vector<8x1xf32>
      %151 = tpu.reciprocal %150 {approx = true} : vector<8x1xf32> -> vector<8x1xf32>
      %152 = vector.broadcast %151 : vector<8x1xf32> to vector<8x8xf32>
      %153 = arith.mulf %148, %152 : vector<8x8xf32>
      %154 = arith.truncf %153 : vector<8x8xf32> to vector<8x8xbf16>
      %cst_75 = arith.constant dense<0.000000e+00> : vector<8x8xf32>
      %155 = tpu.matmul %154, %142, %cst_75 {dimension_numbers = #tpu.dot_dimension_numbers<[1], [0], [0], [1], [0, 0, 1, 1], [], []>} : vector<8x8xbf16>, vector<8x8xbf16>, vector<8x8xf32> -> vector<8x8xf32>
      %156 = vector.extract_strided_slice %113 {offsets = [0, 16], sizes = [8, 8], strides = [1, 1]} : vector<8x96xf32> to vector<8x8xf32>
      %cst_76 = arith.constant 0.353553385 : f32
      %157 = vector.broadcast %cst_76 : f32 to vector<8x8xf32>
      %158 = arith.mulf %156, %157 : vector<8x8xf32>
      %159 = arith.truncf %158 : vector<8x8xf32> to vector<8x8xbf16>
      %160 = vector.extract_strided_slice %113 {offsets = [0, 48], sizes = [8, 8], strides = [1, 1]} : vector<8x96xf32> to vector<8x8xf32>
      %161 = arith.truncf %160 : vector<8x8xf32> to vector<8x8xbf16>
      %162 = vector.extract_strided_slice %113 {offsets = [0, 80], sizes = [8, 8], strides = [1, 1]} : vector<8x96xf32> to vector<8x8xf32>
      %163 = arith.truncf %162 : vector<8x8xf32> to vector<8x8xbf16>
      %cst_77 = arith.constant dense<0.000000e+00> : vector<8x8xf32>
      %164 = tpu.matmul %159, %161, %cst_77 {dimension_numbers = #tpu.dot_dimension_numbers<[1], [1], [0], [0], [0, 0, 1, 0], [], []>} : vector<8x8xbf16>, vector<8x8xbf16>, vector<8x8xf32> -> vector<8x8xf32>
      %cst_78 = arith.constant dense<0xFF800000> : vector<8xf32>
      %165 = vector.multi_reduction <maximumf>, %164, %cst_78 [1] : vector<8x8xf32> to vector<8xf32>
      %166 = vector.shape_cast %165 : vector<8xf32> to vector<8x1xf32>
      %167 = vector.broadcast %166 : vector<8x1xf32> to vector<8x8xf32>
      %168 = arith.subf %164, %167 : vector<8x8xf32>
      %169 = math.exp %168 : vector<8x8xf32>
      %cst_79 = arith.constant dense<0.000000e+00> : vector<8xf32>
      %170 = vector.multi_reduction <add>, %169, %cst_79 [1] : vector<8x8xf32> to vector<8xf32>
      %171 = vector.shape_cast %170 : vector<8xf32> to vector<8x1xf32>
      %172 = tpu.reciprocal %171 {approx = true} : vector<8x1xf32> -> vector<8x1xf32>
      %173 = vector.broadcast %172 : vector<8x1xf32> to vector<8x8xf32>
      %174 = arith.mulf %169, %173 : vector<8x8xf32>
      %175 = arith.truncf %174 : vector<8x8xf32> to vector<8x8xbf16>
      %cst_80 = arith.constant dense<0.000000e+00> : vector<8x8xf32>
      %176 = tpu.matmul %175, %163, %cst_80 {dimension_numbers = #tpu.dot_dimension_numbers<[1], [0], [0], [1], [0, 0, 1, 1], [], []>} : vector<8x8xbf16>, vector<8x8xbf16>, vector<8x8xf32> -> vector<8x8xf32>
      %177 = vector.extract_strided_slice %113 {offsets = [0, 24], sizes = [8, 8], strides = [1, 1]} : vector<8x96xf32> to vector<8x8xf32>
      %cst_81 = arith.constant 0.353553385 : f32
      %178 = vector.broadcast %cst_81 : f32 to vector<8x8xf32>
      %179 = arith.mulf %177, %178 : vector<8x8xf32>
      %180 = arith.truncf %179 : vector<8x8xf32> to vector<8x8xbf16>
      %181 = vector.extract_strided_slice %113 {offsets = [0, 56], sizes = [8, 8], strides = [1, 1]} : vector<8x96xf32> to vector<8x8xf32>
      %182 = arith.truncf %181 : vector<8x8xf32> to vector<8x8xbf16>
      %183 = vector.extract_strided_slice %113 {offsets = [0, 88], sizes = [8, 8], strides = [1, 1]} : vector<8x96xf32> to vector<8x8xf32>
      %184 = arith.truncf %183 : vector<8x8xf32> to vector<8x8xbf16>
      %cst_82 = arith.constant dense<0.000000e+00> : vector<8x8xf32>
      %185 = tpu.matmul %180, %182, %cst_82 {dimension_numbers = #tpu.dot_dimension_numbers<[1], [1], [0], [0], [0, 0, 1, 0], [], []>} : vector<8x8xbf16>, vector<8x8xbf16>, vector<8x8xf32> -> vector<8x8xf32>
      %cst_83 = arith.constant dense<0xFF800000> : vector<8xf32>
      %186 = vector.multi_reduction <maximumf>, %185, %cst_83 [1] : vector<8x8xf32> to vector<8xf32>
      %187 = vector.shape_cast %186 : vector<8xf32> to vector<8x1xf32>
      %188 = vector.broadcast %187 : vector<8x1xf32> to vector<8x8xf32>
      %189 = arith.subf %185, %188 : vector<8x8xf32>
      %190 = math.exp %189 : vector<8x8xf32>
      %cst_84 = arith.constant dense<0.000000e+00> : vector<8xf32>
      %191 = vector.multi_reduction <add>, %190, %cst_84 [1] : vector<8x8xf32> to vector<8xf32>
      %192 = vector.shape_cast %191 : vector<8xf32> to vector<8x1xf32>
      %193 = tpu.reciprocal %192 {approx = true} : vector<8x1xf32> -> vector<8x1xf32>
      %194 = vector.broadcast %193 : vector<8x1xf32> to vector<8x8xf32>
      %195 = arith.mulf %190, %194 : vector<8x8xf32>
      %196 = arith.truncf %195 : vector<8x8xf32> to vector<8x8xbf16>
      %cst_85 = arith.constant dense<0.000000e+00> : vector<8x8xf32>
      %197 = tpu.matmul %196, %184, %cst_85 {dimension_numbers = #tpu.dot_dimension_numbers<[1], [0], [0], [1], [0, 0, 1, 1], [], []>} : vector<8x8xbf16>, vector<8x8xbf16>, vector<8x8xf32> -> vector<8x8xf32>
      %198 = tpu.concatenate %134, %155, %176, %197 in 1 : vector<8x8xf32>, vector<8x8xf32>, vector<8x8xf32>, vector<8x8xf32> -> vector<8x32xf32>
      %199 = arith.index_cast %111 : i32 to index
      %c0_86 = arith.constant 0 : index
      %200 = vector.load %arg20[%199, %c0_86] : memref<16x32xf32, #tpu.memory_space<vmem>>, vector<8x32xf32>
      tpu.vector_store %arg20[%199, %c0_86], %198 {strides = array<i32>} : memref<16x32xf32, #tpu.memory_space<vmem>>, vector<8x32xf32>,
    }
    %c2_i32_11 = arith.constant 2 : i32
    %c0_12 = arith.constant 0 : index
    %c0_13 = arith.constant 0 : index
    %14 = vector.load %arg20[%c0_12, %c0_13] : memref<16x32xf32, #tpu.memory_space<vmem>>, vector<16x32xf32>
    %15 = arith.truncf %14 : vector<16x32xf32> to vector<16x32xbf16>
    %c0_14 = arith.constant 0 : index
    %c0_15 = arith.constant 0 : index
    %c0_16 = arith.constant 0 : index
    %16 = vector.load %arg6[%c0_14, %c0_15, %c0_16] : memref<1x32x32xbf16, #tpu.memory_space<vmem>>, vector<1x32x32xbf16>
    %17 = vector.shape_cast %16 : vector<1x32x32xbf16> to vector<32x32xbf16>
    %cst_17 = arith.constant dense<0.000000e+00> : vector<16x32xf32>
    %18 = tpu.matmul %15, %17, %cst_17 {dimension_numbers = #tpu.dot_dimension_numbers<[1], [0], [0], [1], [0, 0, 1, 1], [], []>} : vector<16x32xbf16>, vector<32x32xbf16>, vector<16x32xf32> -> vector<16x32xf32>
    %c0_18 = arith.constant 0 : index
    %c0_19 = arith.constant 0 : index
    %c0_20 = arith.constant 0 : index
    %19 = vector.load %arg7[%c0_18, %c0_19, %c0_20] : memref<1x1x32xf32, #tpu.memory_space<vmem>>, vector<1x1x32xf32>
    %20 = vector.shape_cast %19 : vector<1x1x32xf32> to vector<1x32xf32>
    %21 = vector.broadcast %20 : vector<1x32xf32> to vector<16x32xf32>
    %22 = arith.addf %18, %21 : vector<16x32xf32>
    %23 = arith.addf %3, %22 : vector<16x32xf32>
    %c0_21 = arith.constant 0 : index
    %c0_22 = arith.constant 0 : index
    %c0_23 = arith.constant 0 : index
    %24 = vector.load %arg8[%c0_21, %c0_22, %c0_23] : memref<1x1x32xf32, #tpu.memory_space<vmem>>, vector<1x1x32xf32>
    %25 = vector.shape_cast %24 : vector<1x1x32xf32> to vector<1x32xf32>
    %c0_24 = arith.constant 0 : index
    %c0_25 = arith.constant 0 : index
    %c0_26 = arith.constant 0 : index
    %26 = vector.load %arg9[%c0_24, %c0_25, %c0_26] : memref<1x1x32xf32, #tpu.memory_space<vmem>>, vector<1x1x32xf32>
    %27 = vector.shape_cast %26 : vector<1x1x32xf32> to vector<1x32xf32>
    %cst_27 = arith.constant dense<0.000000e+00> : vector<16xf32>
    %28 = vector.multi_reduction <add>, %23, %cst_27 [1] : vector<16x32xf32> to vector<16xf32>
    %29 = vector.shape_cast %28 : vector<16xf32> to vector<16x1xf32>
    %cst_28 = arith.constant 3.200000e+01 : f32
    %30 = vector.broadcast %cst_28 : f32 to vector<16x1xf32>
    %31 = arith.divf %29, %30 : vector<16x1xf32>
    %32 = vector.broadcast %31 : vector<16x1xf32> to vector<16x32xf32>
    %33 = arith.subf %23, %32 : vector<16x32xf32>
    %34 = arith.mulf %33, %33 : vector<16x32xf32>
    %cst_29 = arith.constant dense<0.000000e+00> : vector<16xf32>
    %35 = vector.multi_reduction <add>, %34, %cst_29 [1] : vector<16x32xf32> to vector<16xf32>
    %36 = vector.shape_cast %35 : vector<16xf32> to vector<16x1xf32>
    %cst_30 = arith.constant 3.200000e+01 : f32
    %37 = vector.broadcast %cst_30 : f32 to vector<16x1xf32>
    %38 = arith.divf %36, %37 : vector<16x1xf32>
    %39 = vector.broadcast %31 : vector<16x1xf32> to vector<16x32xf32>
    %40 = arith.subf %23, %39 : vector<16x32xf32>
    %cst_31 = arith.constant 9.99999996E-13 : f32
    %41 = vector.broadcast %cst_31 : f32 to vector<16x1xf32>
    %42 = arith.addf %38, %41 : vector<16x1xf32>
    %43 = math.rsqrt %42 : vector<16x1xf32>
    %44 = vector.broadcast %43 : vector<16x1xf32> to vector<16x32xf32>
    %45 = arith.mulf %40, %44 : vector<16x32xf32>
    %46 = vector.broadcast %25 : vector<1x32xf32> to vector<16x32xf32>
    %47 = arith.mulf %45, %46 : vector<16x32xf32>
    %48 = vector.broadcast %27 : vector<1x32xf32> to vector<16x32xf32>
    %49 = arith.addf %47, %48 : vector<16x32xf32>
    %50 = arith.truncf %49 : vector<16x32xf32> to vector<16x32xbf16>
    %c0_32 = arith.constant 0 : index
    %c0_33 = arith.constant 0 : index
    %c0_34 = arith.constant 0 : index
    %51 = vector.load %arg10[%c0_32, %c0_33, %c0_34] : memref<1x32x64xbf16, #tpu.memory_space<vmem>>, vector<1x32x64xbf16>
    %52 = vector.shape_cast %51 : vector<1x32x64xbf16> to vector<32x64xbf16>
    %cst_35 = arith.constant dense<0.000000e+00> : vector<16x64xf32>
    %53 = tpu.matmul %50, %52, %cst_35 {dimension_numbers = #tpu.dot_dimension_numbers<[1], [0], [0], [1], [0, 0, 1, 1], [], []>} : vector<16x32xbf16>, vector<32x64xbf16>, vector<16x64xf32> -> vector<16x64xf32>
    %c0_36 = arith.constant 0 : index
    %c0_37 = arith.constant 0 : index
    %c0_38 = arith.constant 0 : index
    %54 = vector.load %arg11[%c0_36, %c0_37, %c0_38] : memref<1x1x64xf32, #tpu.memory_space<vmem>>, vector<1x1x64xf32>
    %55 = vector.shape_cast %54 : vector<1x1x64xf32> to vector<1x64xf32>
    %56 = vector.broadcast %55 : vector<1x64xf32> to vector<16x64xf32>
    %57 = arith.addf %53, %56 : vector<16x64xf32>
    %58 = arith.mulf %57, %57 : vector<16x64xf32>
    %59 = arith.mulf %57, %58 : vector<16x64xf32>
    %cst_39 = arith.constant 4.471500e-02 : f32
    %60 = vector.broadcast %cst_39 : f32 to vector<16x64xf32>
    %61 = arith.mulf %60, %59 : vector<16x64xf32>
    %62 = arith.addf %57, %61 : vector<16x64xf32>
    %cst_40 = arith.constant 0.797884583 : f32
    %63 = vector.broadcast %cst_40 : f32 to vector<16x64xf32>
    %64 = arith.mulf %63, %62 : vector<16x64xf32>
    %65 = math.tanh %64 : vector<16x64xf32>
    %cst_41 = arith.constant 1.000000e+00 : f32
    %66 = vector.broadcast %cst_41 : f32 to vector<16x64xf32>
    %67 = arith.addf %66, %65 : vector<16x64xf32>
    %cst_42 = arith.constant 5.000000e-01 : f32
    %68 = vector.broadcast %cst_42 : f32 to vector<16x64xf32>
    %69 = arith.mulf %68, %67 : vector<16x64xf32>
    %70 = arith.mulf %57, %69 : vector<16x64xf32>
    %71 = arith.truncf %70 : vector<16x64xf32> to vector<16x64xbf16>
    %c0_43 = arith.constant 0 : index
    %c0_44 = arith.constant 0 : index
    %c0_45 = arith.constant 0 : index
    %72 = vector.load %arg12[%c0_43, %c0_44, %c0_45] : memref<1x64x32xbf16, #tpu.memory_space<vmem>>, vector<1x64x32xbf16>
    %73 = vector.shape_cast %72 : vector<1x64x32xbf16> to vector<64x32xbf16>
    %cst_46 = arith.constant dense<0.000000e+00> : vector<16x32xf32>
    %74 = tpu.matmul %71, %73, %cst_46 {dimension_numbers = #tpu.dot_dimension_numbers<[1], [0], [0], [1], [0, 0, 1, 1], [], []>} : vector<16x64xbf16>, vector<64x32xbf16>, vector<16x32xf32> -> vector<16x32xf32>
    %c0_47 = arith.constant 0 : index
    %c0_48 = arith.constant 0 : index
    %c0_49 = arith.constant 0 : index
    %75 = vector.load %arg13[%c0_47, %c0_48, %c0_49] : memref<1x1x32xf32, #tpu.memory_space<vmem>>, vector<1x1x32xf32>
    %76 = vector.shape_cast %75 : vector<1x1x32xf32> to vector<1x32xf32>
    %77 = vector.broadcast %76 : vector<1x32xf32> to vector<16x32xf32>
    %78 = arith.addf %74, %77 : vector<16x32xf32>
    %79 = arith.addf %49, %78 : vector<16x32xf32>
    %c0_50 = arith.constant 0 : index
    %c0_51 = arith.constant 0 : index
    %c0_52 = arith.constant 0 : index
    %80 = vector.load %arg14[%c0_50, %c0_51, %c0_52] : memref<1x1x32xf32, #tpu.memory_space<vmem>>, vector<1x1x32xf32>
    %81 = vector.shape_cast %80 : vector<1x1x32xf32> to vector<1x32xf32>
    %c0_53 = arith.constant 0 : index
    %c0_54 = arith.constant 0 : index
    %c0_55 = arith.constant 0 : index
    %82 = vector.load %arg15[%c0_53, %c0_54, %c0_55] : memref<1x1x32xf32, #tpu.memory_space<vmem>>, vector<1x1x32xf32>
    %83 = vector.shape_cast %82 : vector<1x1x32xf32> to vector<1x32xf32>
    %cst_56 = arith.constant dense<0.000000e+00> : vector<16xf32>
    %84 = vector.multi_reduction <add>, %79, %cst_56 [1] : vector<16x32xf32> to vector<16xf32>
    %85 = vector.shape_cast %84 : vector<16xf32> to vector<16x1xf32>
    %cst_57 = arith.constant 3.200000e+01 : f32
    %86 = vector.broadcast %cst_57 : f32 to vector<16x1xf32>
    %87 = arith.divf %85, %86 : vector<16x1xf32>
    %88 = vector.broadcast %87 : vector<16x1xf32> to vector<16x32xf32>
    %89 = arith.subf %79, %88 : vector<16x32xf32>
    %90 = arith.mulf %89, %89 : vector<16x32xf32>
    %cst_58 = arith.constant dense<0.000000e+00> : vector<16xf32>
    %91 = vector.multi_reduction <add>, %90, %cst_58 [1] : vector<16x32xf32> to vector<16xf32>
    %92 = vector.shape_cast %91 : vector<16xf32> to vector<16x1xf32>
    %cst_59 = arith.constant 3.200000e+01 : f32
    %93 = vector.broadcast %cst_59 : f32 to vector<16x1xf32>
    %94 = arith.divf %92, %93 : vector<16x1xf32>
    %95 = vector.broadcast %87 : vector<16x1xf32> to vector<16x32xf32>
    %96 = arith.subf %79, %95 : vector<16x32xf32>
    %cst_60 = arith.constant 9.99999996E-13 : f32
    %97 = vector.broadcast %cst_60 : f32 to vector<16x1xf32>
    %98 = arith.addf %94, %97 : vector<16x1xf32>
    %99 = math.rsqrt %98 : vector<16x1xf32>
    %100 = vector.broadcast %99 : vector<16x1xf32> to vector<16x32xf32>
    %101 = arith.mulf %96, %100 : vector<16x32xf32>
    %102 = vector.broadcast %81 : vector<1x32xf32> to vector<16x32xf32>
    %103 = arith.mulf %101, %102 : vector<16x32xf32>
    %104 = vector.broadcast %83 : vector<1x32xf32> to vector<16x32xf32>
    %105 = arith.addf %103, %104 : vector<16x32xf32>
    %c0_61 = arith.constant 0 : index
    %c0_62 = arith.constant 0 : index
    %106 = vector.load %arg19[%c0_61, %c0_62] : memref<16x32xf32, #tpu.memory_space<vmem>>, vector<16x32xf32>
    tpu.vector_store %arg19[%c0_61, %c0_62], %105 {strides = array<i32>} : memref<16x32xf32, #tpu.memory_space<vmem>>, vector<16x32xf32>,
    %c1_i32_63 = arith.constant 1 : i32
    %107 = arith.cmpi eq, %arg0, %c1_i32_63 : i32
    %108 = arith.extui %107 : i1 to i32
    %c0_i32_64 = arith.constant 0 : i32
    %109 = arith.cmpi ne, %108, %c0_i32_64 : i32
    scf.if %109 {
      %110 = vector.extract_strided_slice %105 {offsets = [0, 0], sizes = [8, 32], strides = [1, 1]} : vector<16x32xf32> to vector<8x32xf32>
      %cst_65 = arith.constant dense<0.000000e+00> : vector<32xf32>
      %111 = vector.multi_reduction <add>, %110, %cst_65 [0] : vector<8x32xf32> to vector<32xf32>
      %112 = vector.shape_cast %111 : vector<32xf32> to vector<1x32xf32>
      %cst_66 = arith.constant 8.000000e+00 : f32
      %113 = vector.broadcast %cst_66 : f32 to vector<1x32xf32>
      %114 = arith.divf %112, %113 : vector<1x32xf32>
      %115 = vector.extract_strided_slice %105 {offsets = [8, 0], sizes = [8, 32], strides = [1, 1]} : vector<16x32xf32> to vector<8x32xf32>
      %cst_67 = arith.constant dense<0.000000e+00> : vector<32xf32>
      %116 = vector.multi_reduction <add>, %115, %cst_67 [0] : vector<8x32xf32> to vector<32xf32>
      %117 = vector.shape_cast %116 : vector<32xf32> to vector<1x32xf32>
      %cst_68 = arith.constant 8.000000e+00 : f32
      %118 = vector.broadcast %cst_68 : f32 to vector<1x32xf32>
      %119 = arith.divf %117, %118 : vector<1x32xf32>
      %120 = tpu.concatenate %114, %119 in 0 : vector<1x32xf32>, vector<1x32xf32> -> vector<2x32xf32>
      %c0_69 = arith.constant 0 : index
      %c0_70 = arith.constant 0 : index
      %121 = vector.load %arg16[%c0_69, %c0_70] : memref<32x128xf32, #tpu.memory_space<vmem>>, vector<32x128xf32>
      %cst_71 = arith.constant dense<0.000000e+00> : vector<2x128xf32>
      %122 = tpu.matmul %120, %121, %cst_71 {dimension_numbers = #tpu.dot_dimension_numbers<[1], [0], [0], [1], [0, 0, 1, 1], [], []>} : vector<2x32xf32>, vector<32x128xf32>, vector<2x128xf32> -> vector<2x128xf32>
      %c0_72 = arith.constant 0 : index
      %c0_73 = arith.constant 0 : index
      %123 = vector.load %arg17[%c0_72, %c0_73] : memref<1x128xf32, #tpu.memory_space<vmem>>, vector<1x128xf32>
      %124 = vector.broadcast %123 : vector<1x128xf32> to vector<2x128xf32>
      %125 = arith.addf %122, %124 : vector<2x128xf32>
      %c0_74 = arith.constant 0 : index
      %c0_75 = arith.constant 0 : index
      %126 = vector.load %arg18[%c0_74, %c0_75] : memref<2x128xf32, #tpu.memory_space<vmem>>, vector<2x128xf32>
      tpu.vector_store %arg18[%c0_74, %c0_75], %125 {strides = array<i32>} : memref<2x128xf32, #tpu.memory_space<vmem>>, vector<2x128xf32>,
    } else {
    }
    return
  }
  func.func @transform_0(%arg0: i32) -> (i32, i32) {
    %c0_i32 = arith.constant 0 : i32
    %c0_i32_0 = arith.constant 0 : i32
    %c0_i32_1 = arith.constant 0 : i32
    return %c0_i32, %c0_i32_0 : i32, i32
  }
  func.func @transform_1(%arg0: i32) -> (i32, i32) {
    %c0_i32 = arith.constant 0 : i32
    %c0_i32_0 = arith.constant 0 : i32
    %c0_i32_1 = arith.constant 0 : i32
    return %c0_i32, %c0_i32_0 : i32, i32
  }
  func.func @transform_2(%arg0: i32) -> (i32, i32) {
    %c0_i32 = arith.constant 0 : i32
    %c0_i32_0 = arith.constant 0 : i32
    %c0_i32_1 = arith.constant 0 : i32
    return %c0_i32, %c0_i32_0 : i32, i32
  }
  func.func @transform_3(%arg0: i32) -> (i32, i32, i32) {
    %c0_i32 = arith.constant 0 : i32
    %c0_i32_0 = arith.constant 0 : i32
    %c0_i32_1 = arith.constant 0 : i32
    return %arg0, %c0_i32, %c0_i32_0 : i32, i32, i32
  }
  func.func @transform_4(%arg0: i32) -> (i32, i32, i32) {
    %c0_i32 = arith.constant 0 : i32
    %c0_i32_0 = arith.constant 0 : i32
    %c0_i32_1 = arith.constant 0 : i32
    return %arg0, %c0_i32, %c0_i32_0 : i32, i32, i32
  }
  func.func @transform_5(%arg0: i32) -> (i32, i32, i32) {
    %c0_i32 = arith.constant 0 : i32
    %c0_i32_0 = arith.constant 0 : i32
    %c0_i32_1 = arith.constant 0 : i32
    return %arg0, %c0_i32, %c0_i32_0 : i32, i32, i32
  }
  func.func @transform_6(%arg0: i32) -> (i32, i32, i32) {
    %c0_i32 = arith.constant 0 : i32
    %c0_i32_0 = arith.constant 0 : i32
    %c0_i32_1 = arith.constant 0 : i32
    return %arg0, %c0_i32, %c0_i32_0 : i32, i32, i32
  }
  func.func @transform_7(%arg0: i32) -> (i32, i32, i32) {
    %c0_i32 = arith.constant 0 : i32
    %c0_i32_0 = arith.constant 0 : i32
    %c0_i32_1 = arith.constant 0 : i32
    return %arg0, %c0_i32, %c0_i32_0 : i32, i32, i32
  }
  func.func @transform_8(%arg0: i32) -> (i32, i32, i32) {
    %c0_i32 = arith.constant 0 : i32
    %c0_i32_0 = arith.constant 0 : i32
    %c0_i32_1 = arith.constant 0 : i32
    return %arg0, %c0_i32, %c0_i32_0 : i32, i32, i32
  }
  func.func @transform_9(%arg0: i32) -> (i32, i32, i32) {
    %c0_i32 = arith.constant 0 : i32
    %c0_i32_0 = arith.constant 0 : i32
    %c0_i32_1 = arith.constant 0 : i32
    return %arg0, %c0_i32, %c0_i32_0 : i32, i32, i32
  }
  func.func @transform_10(%arg0: i32) -> (i32, i32, i32) {
    %c0_i32 = arith.constant 0 : i32
    %c0_i32_0 = arith.constant 0 : i32
    %c0_i32_1 = arith.constant 0 : i32
    return %arg0, %c0_i32, %c0_i32_0 : i32, i32, i32
  }
  func.func @transform_11(%arg0: i32) -> (i32, i32, i32) {
    %c0_i32 = arith.constant 0 : i32
    %c0_i32_0 = arith.constant 0 : i32
    %c0_i32_1 = arith.constant 0 : i32
    return %arg0, %c0_i32, %c0_i32_0 : i32, i32, i32
  }
  func.func @transform_12(%arg0: i32) -> (i32, i32, i32) {
    %c0_i32 = arith.constant 0 : i32
    %c0_i32_0 = arith.constant 0 : i32
    %c0_i32_1 = arith.constant 0 : i32
    return %arg0, %c0_i32, %c0_i32_0 : i32, i32, i32
  }
  func.func @transform_13(%arg0: i32) -> (i32, i32, i32) {
    %c0_i32 = arith.constant 0 : i32
    %c0_i32_0 = arith.constant 0 : i32
    %c0_i32_1 = arith.constant 0 : i32
    return %arg0, %c0_i32, %c0_i32_0 : i32, i32, i32
  }
  func.func @transform_14(%arg0: i32) -> (i32, i32, i32) {
    %c0_i32 = arith.constant 0 : i32
    %c0_i32_0 = arith.constant 0 : i32
    %c0_i32_1 = arith.constant 0 : i32
    return %arg0, %c0_i32, %c0_i32_0 : i32, i32, i32
  }
  func.func @transform_15(%arg0: i32) -> (i32, i32) {
    %c0_i32 = arith.constant 0 : i32
    %c0_i32_0 = arith.constant 0 : i32
    %c0_i32_1 = arith.constant 0 : i32
    return %c0_i32, %c0_i32_0 : i32, i32
  }
  func.func @transform_16(%arg0: i32) -> (i32, i32) {
    %c0_i32 = arith.constant 0 : i32
    %c0_i32_0 = arith.constant 0 : i32
    %c0_i32_1 = arith.constant 0 : i32
    return %c0_i32, %c0_i32_0 : i32, i32
  }
  func.func @transform_17(%arg0: i32) -> (i32, i32) {
    %c0_i32 = arith.constant 0 : i32
    %c0_i32_0 = arith.constant 0 : i32
    %c0_i32_1 = arith.constant 0 : i32
    return %c0_i32, %c0_i32_0 : i32, i32
  }
}

</mosaic_0001>

<bundles_post_ra>
// kernel: tpu_custom_call.1
= control target key start
LH: loop header
LB: loop body
LE: loop exit
PB: predicated region body
PF: predicated region fallthrough
CT: control target
= control target key end

     0   :  { %s2671_s0 = inlined_call_operand.hbm [shape: f32[16,32], index: 0, kind: input, shape index: {}]   ;;  %s2672_s1 = inlined_call_operand.hbm [shape: f32[1,32], index: 1, kind: input, shape index: {}]   ;;  %s2673_s2 = inlined_call_operand.vmem [shape: f32[1,32], index: 2, kind: input, shape index: {}]   ;;  %s2674_s3 = inlined_call_operand.vmem [shape: bf16[2,32,96], index: 3, kind: input, shape index: {}]   ;;  %s2675_s4 = inlined_call_operand.vmem [shape: f32[2,1,96], index: 4, kind: input, shape index: {}]   ;;  %s2676_s5 = inlined_call_operand.vmem [shape: bf16[2,32,32], index: 5, kind: input, shape index: {}]   ;;  %s2677_s6 = inlined_call_operand.vmem [shape: f32[2,1,32], index: 6, kind: input, shape index: {}]   ;;  %s2678_s7 = inlined_call_operand.hbm [shape: f32[2,1,32], index: 7, kind: input, shape index: {}]   ;;  %s2679_s8 = inlined_call_operand.vmem [shape: f32[2,1,32], index: 8, kind: input, shape index: {}]   ;;  %s2680_s9 = inlined_call_operand.vmem [shape: bf16[2,32,64], index: 9, kind: input, shape index: {}]   ;;  %s2681_s10 = inlined_call_operand.vmem [shape: f32[2,1,64], index: 10, kind: input, shape index: {}]   ;;  %s2682_s11 = inlined_call_operand.vmem [shape: bf16[2,64,32], index: 11, kind: input, shape index: {}]   ;;  %s2683_s12 = inlined_call_operand.vmem [shape: f32[2,1,32], index: 12, kind: input, shape index: {}]   ;;  %s2684_s13 = inlined_call_operand.hbm [shape: f32[2,1,32], index: 13, kind: input, shape index: {}]   ;;  %s2685_s14 = inlined_call_operand.vmem [shape: f32[2,1,32], index: 14, kind: input, shape index: {}]   ;;  %s2686_s15 = inlined_call_operand.hbm [shape: f32[32,128], index: 15, kind: input, shape index: {}]   ;;  %s2687_s16 = inlined_call_operand.vmem [shape: f32[1,128], index: 16, kind: input, shape index: {}]   ;;  %s2688_s17 = inlined_call_operand.hbm [shape: f32[2,128], index: 17, kind: output, shape index: {}]  }
   0x1   :  { %2695 = sst [smem:[#allocation22_spill]] %s2671_s0 }
   0x2   :  { %2696 = sst [smem:[#allocation23_spill]] %s2672_s1 }
   0x3   :  { %2697 = sst [smem:[#allocation24_spill]] %s2673_s2 }
   0x4   :  { %2698 = sst [smem:[#allocation25_spill]] %s2674_s3 }
   0x5   :  { %2699 = sst [smem:[#allocation26_spill]] %s2676_s5 }
   0x6   :  { %2700 = sst [smem:[#allocation27_spill]] %s2678_s7 }
   0x7   :  { %2701 = sst [smem:[#allocation28_spill]] %s2681_s10 }
   0x8   :  { %2702 = sst [smem:[#allocation29_spill]] %s2682_s11 }
   0x9   :  { %2703 = sst [smem:[#allocation30_spill]] %s2683_s12 }
   0xa   :  { %2704 = sst [smem:[#allocation31_spill]] %s2684_s13 }
   0xb   :  { %2705 = sst [smem:[#allocation32_spill]] %s2685_s14 }
   0xc   :  { %2706 = sst [smem:[#allocation33_spill]] %s2686_s15 }
   0xd   :  { %2707 = sst [smem:[#allocation34_spill]] %s2687_s16 }
   0xe   :  { %2708 = sst [smem:[#allocation35_spill]] %s2688_s17 }
   0xf   :  { %22 = vsyncpa [#allocation6], 0 }
  0x10   :  { %23 = vsyncpa [#allocation9], 0 }
  0x11   :  { %24 = vsyncpa [#allocation7], 0  ;;  %s2313_s24 = smov 0   ;;  %s2315_s25 = smov 0  }
  0x12   :  { %s2317_s26 = smov 0   ;;  %s2319_s27 = smov 0  }
  0x13 LB: > { %2709 = sst [smem:[#allocation19_spill]] %s2190_s26  ;;  %s2332_s28 = sadd.s32 4294967295, %s2194_s27   ;;  %s2194_s27 = sphi %s2319_s27, %s2739_s27   ;;  %s2190_s26 = sphi %s2317_s26, %s2741_s26   ;;  %s2186_s25 = sphi %s2315_s25, %s2743_s25   ;;  %s2182_s24 = sphi %s2313_s24, %s2742_s24  }
  0x14   : > { %p217_p0 = scmp.ne.s32.totalorder %s2186_s25, %s2182_s24  ;;  %p218_p1 = scmp.eq.s32.totalorder %s2332_s28, 0 }
  0x15   : > { %p1713_p2 = scmp.ge.s32.totalorder %s2194_s27, 1  ;;  %p473_p3 = scmp.lt.s32.totalorder %s2194_s27, 3 }
  0x16   : > { %p1714_p4 = scmp.ne.s32.totalorder %s2332_s28, 0  ;;  %p2341_p5 = por %p218_p1, %p217_p0 }
  0x17   : > { %s2711_s18 = sld [smem:[#allocation22_spill]]  ;;  %p2348_p6 = pnand %p1713_p2, %p473_p3 }
  0x18   : > { %s2200_s20 = smov [#allocation5]   ;;  %s2714_s0 = sld [smem:[#allocation23_spill]] }
  0x19   : > { %p1824_p7 = pneg %p2348_p6  ;;  %s486_s21 = sshll.u32 %s2200_s20, 4  ;;  %s487_s21 = int_to_ptr.vmem [resolvable:$true] %s486_s21 }
  0x1a   : > { %s2690_s17 = smov 8   ;;  %s2203_s20 = smov [#allocation8]  }
  0x1b   : > { %p2356_p8 = pnand %p1824_p7, %p218_p1  ;;  %s501_s16 = sshll.u32 %s2203_s20, 4  ;;  %s502_s16 = int_to_ptr.vmem [resolvable:$true] %s501_s16 }
  0x1c   : > { %s2371_s23 = sadd.s32 1, %s2194_s27   ;;  %s204_s24 = sadd.s32 1, %s2190_s26 }
  0x1d   : > { %s484_s19 = sshll.u32 %s2711_s18, 4  ;;  %s2689_s18 = smov 128   ;;  %s485_s19 = int_to_ptr.hbm [resolvable:$true] %s484_s19 }
  0x1e   : > { %s499_s30 = sshll.u32 %s2714_s0, 4  ;;  %2715 = sst [smem:[#allocation20_spill]] %s2371_s23  ;;  %s500_s30 = int_to_ptr.hbm [resolvable:$true] %s499_s30 }
  0x1f   : > { %1827 = dma.hbm_to_vmem [thread:$0]  (!%p2356_p8), %s485_s19, 256, %s487_s21, [#allocation6], %s2689_s18, %s2689_s18, %s2690_s17  }
  0x20   : > { %1830 = dma.hbm_to_vmem [thread:$0]  (!%p2356_p8), %s500_s30, 16, %s502_s16, [#allocation9]  }
  0x21   : > { %s201_s0 = ssub.s32 %s2194_s27, %s2371_s23  ;;  %p211_p9 = scmp.ne.s32.totalorder %s2190_s26, %s2186_s25 }
  0x22   : > { %p202_p10 = scmp.eq.s32.totalorder %s201_s0, 0  ;;  %p212_p11 = scmp.eq.s32.totalorder %s2194_s27, 0 }
  0x23   : > { %p1844_p12 = scmp.lt.s32.totalorder %s2194_s27, 2  ;;  %s560_s2 = sand.u32 1, %s2194_s27  }
  0x24   : > { %s2382_s14 = scalar_select %p202_p10, %s2190_s26, %s204_s24  }
  0x25   : > { %p213_p13 = por %p212_p11, %p211_p9  ;;  %s2693_s19 = sand.u32 1, %s2190_s26  }
  0x26   : > { %2716 = sst [smem:[#allocation21_spill]] %s2382_s14  ;;  %s563_s16 = scalar_lea.vmem [#allocation10], %s2693_s19 }
  0x27   : > { %s2717_s7 = sld [smem:[#allocation27_spill]]  ;;  %s570_s30 = sshll.u32 %s563_s16, 4  ;;  %s571_s30 = int_to_ptr.vmem [resolvable:$true] %s570_s30 }
  0x28   : > { %p2391_p0 = pnand %p1844_p12, %p213_p13  ;;  %s2719_s15 = sld [smem:[#allocation33_spill]] }
  0x29   : > { %s2398_s14 = scalar_lea.sflag [#allocation6], %s560_s2 }
  0x2a   : > { %p2026_p3 = pneg %p2391_p0 }
  0x2d   : > { %s566_s18 = scalar_lea.hbm %s2717_s7, %s2194_s27  ;;  %s2029_s11 = scalar_lea.hbm %s2717_s7, 2 }
  0x2e   : > { %s568_s17 = sshll.u32 %s566_s18, 4  ;;  %s513_s24 = sshll.u32 %s2719_s15, 4  ;;  %s569_s17 = int_to_ptr.hbm [resolvable:$true] %s568_s17  ;;  %s514_s24 = int_to_ptr.hbm [resolvable:$true] %s513_s24 }
  0x2f   : > { %s2022_s21 = sshra.s32 %s569_s17, 4  ;;  %s2023_s21 = int_to_ptr.hbm [resolvable:$true] %s2022_s21 }
  0x30   : > { %s2024_s18 = scalar_lea.hbm %s2023_s21, 1  ;;  %p2030_p10 = scmp.lt.s32.totalorder %s2023_s21, %s2717_s7 }
  0x31   : > { %p2025_p2 = scmp.ne.s32.totalorder %s2023_s21, %s2024_s18  ;;  %p2031_p11 = scmp.lt.s32.totalorder %s2029_s11, %s2024_s18 }
  0x33   : > { %p2027_p7 = pnand %p2026_p3, %p2025_p2  ;;  %p2032_p12 = por %p2031_p11, %p2030_p10 }
  0x35   : > { %p2028_p9 = pneg %p2027_p7 }
  0x37   : > { %p2033_p13 = pnand %p2032_p12, %p2028_p9 }
  0x39   : > { %2036 = shalt.err (!%p2033_p13)
}
  0x3a   : > { %1837 = dma.hbm_to_vmem [thread:$0]  (!%p2391_p0), %s569_s17, 16, %s571_s30, %s2398_s14  }
  0x3b   : > { %s2204_s2 = smov [#allocation12]   ;;  %s2720_s13 = sld [smem:[#allocation31_spill]] }
  0x3c   : > { %s515_s15 = sshll.u32 %s2204_s2, 4  ;;  %s2721_s21 = smov 8   ;;  %s516_s15 = int_to_ptr.vmem [resolvable:$true] %s515_s15 }
  0x3d   : > { %s2722_s18 = smov 128   ;;  %s2723_s0 = sand.u32 1, %s2190_s26  }
  0x3e   : > { %1833 = dma.hbm_to_vmem [thread:$0]  (!%p2356_p8), %s514_s24, 512, %s516_s15, [#allocation9], %s2722_s18, %s2722_s18, %s2721_s21  }
  0x3f   : > { %s614_s7 = scalar_lea.vmem [#allocation11], %s2723_s0 }
  0x40   : > { %s621_s12 = sshll.u32 %s614_s7, 4  ;;  %s622_s12 = int_to_ptr.vmem [resolvable:$true] %s621_s12 }
  0x41   : > { %s617_s19 = scalar_lea.hbm %s2720_s13, %s2194_s27  ;;  %s2089_s30 = scalar_lea.hbm %s2720_s13, 2 }
  0x42   : > { %s619_s11 = sshll.u32 %s617_s19, 4  ;;  %s620_s11 = int_to_ptr.hbm [resolvable:$true] %s619_s11 }
  0x43   : > { %s2082_s10 = sshra.s32 %s620_s11, 4  ;;  %s2083_s10 = int_to_ptr.hbm [resolvable:$true] %s2082_s10 }
  0x44   : > { %s2084_s17 = scalar_lea.hbm %s2083_s10, 1  ;;  %p2090_p8 = scmp.lt.s32.totalorder %s2083_s10, %s2720_s13 }
  0x45   : > { %p2085_p2 = scmp.ne.s32.totalorder %s2083_s10, %s2084_s17  ;;  %p2091_p10 = scmp.lt.s32.totalorder %s2089_s30, %s2084_s17 }
  0x47   : > { %p2087_p7 = pnand %p2085_p2, %p2026_p3  ;;  %p2092_p11 = por %p2091_p10, %p2090_p8 }
  0x49   : > { %p2088_p9 = pneg %p2087_p7 }
  0x4b   : > { %p2093_p12 = pnand %p2092_p11, %p2088_p9 }
  0x4d   : > { %2096 = shalt.err (!%p2093_p12)
}
  0x4e   : > { %1840 = dma.hbm_to_vmem [thread:$0]  (!%p2391_p0), %s620_s11, 16, %s622_s12, %s2398_s14  }
  0x4f   : > { %636 = sbr.rel (%p2348_p6) target bundleno = 2862 (0xb2e), region = 88 }
  0x54   : > { %2161 = dma.done.wait (%p218_p1), [#allocation6], 256  }
  0x55   : > { %2163 = vsyncadd (%p218_p1), [#allocation6], 4294967040 }
  0x56   : > { %2165 = dma.done.wait (%p218_p1), [#allocation9], 16  }
  0x57   : > { %2167 = vsyncadd (%p218_p1), [#allocation9], 4294967280  ;;  %s648_s7 = sand.u32 1, %s2332_s28   ;;  %s650_s10 = sand.u32 1, %s2186_s25  }
  0x58   : > { %s649_s12 = scalar_lea.sflag [#allocation6], %s648_s7  ;;  %s2449_s14 = scalar_lea.vmem [#allocation10], %s650_s10 }
  0x59   : > { %2169 = dma.done.wait (%p2341_p5), %s649_s12, 32  }
  0x5a   : > { %2171 = vsyncadd (%p2341_p5), %s649_s12, 4294967264  ;;  %s2455_s1 = scalar_lea.vmem [#allocation11], %s650_s10 }
  0x5b   : > { %2173 = dma.done.wait (%p218_p1), [#allocation9], 512  }
  0x5c   : > { %2175 = vsyncadd (%p218_p1), [#allocation9], 4294966784  ;;  %p753_p6 = scmp.lt.s32.totalorder %s2332_s28, 1  ;;  %s2724_s3 = sld [smem:[#allocation25_spill]] }
  0x5d   : > { %s2725_s5 = sld [smem:[#allocation26_spill]] }
  0x5e   : > { %s2463_s23 = scalar_select %p753_p6, %s2332_s28, 1 }
  0x5f   : > { %s2726_s21 = sld [smem:[#allocation28_spill]] }
  0x60   : > { %s1790_s29 = sshll.u32 %s2463_s23, 4  ;;  %s1793_s11 = sshll.u32 %s2463_s23, 5 }
  0x61   : > { %s2491_s24 = scalar_lea.vmem %s2680_s9, %s1790_s29  ;;  %s2728_s30 = sld [smem:[#allocation29_spill]] }
  0x62   : > { %s2473_s18 = scalar_lea.vmem %s2724_s3, %s1790_s29  ;;  %s2729_s7 = sld [smem:[#allocation32_spill]] }
  0x63   : > { %s2478_s17 = scalar_lea.vmem %s2725_s5, %s1790_s29  ;;  %s2727_s5 = sld [smem:[#allocation30_spill]] }
  0x64   : > { %s2730_s29 = sld [smem:[#allocation24_spill]] (!%p1714_p4) }
  0x65   : > { %s779_s16 = scalar_lea.vmem %s2726_s21, %s2463_s23  ;;  %795 = sbr.rel (%p1714_p4) target bundleno = 384 (0x180), region = 112 }
  0x67   : > { %s2505_s26 = scalar_lea.vmem %s2728_s30, %s1793_s11 }
  0x68   : > { %s790_s10 = scalar_lea.vmem %s2729_s7, %s2463_s23 }
  0x69   : > { %s787_s13 = scalar_lea.vmem %s2727_s5, %s2463_s23 }
  0x6a   : > { %v796_v0 = vld [vmem:[#allocation5] sm:$0xff]  ;;  %vm800_vm0 = vcmask 261120   ;;  %v797_v2 = vld [vmem:[#allocation5 + $0x8] sm:$0xff]  ;;  %v2205_v4 = vmov 32.0   ;;  %v1913_v35 = vld [vmem:[#allocation8] ss:$0 sm:$0xff] }
  0x6b   : > { %v801_v1 = vsel %vm800_vm0, %v796_v0, 0.0  ;;  %v804_v3 = vsel %vm800_vm0, %v797_v2, 0.0  ;;  %1915 = vrcp.f32 %v2205_v4  ;;  %v1914_v38 = vld [vmem:[%s2730_s29] ss:$0 sm:$0xff] }
  0x6c   : > { %802 = vadd.xlane.f32.xlu0 %v801_v1 }
  0x71   : > { %v1916_v5 = vpop.eup %1915 }
  0x72   : > { %v808_v6 = vmul.f32 32.0, %v1916_v5  ;;  %vm812_vm1 = vweird.f32 %v1916_v5 }
  0x74   : > { %805 = vadd.xlane.f32.xlu0 %v804_v3  ;;  %v809_v7 = vsub.f32 1.0, %v808_v6 }
  0x76   : > { %v810_v8 = vmul.f32 %v1916_v5, %v809_v7 }
  0x78   : > { %v811_v9 = vadd.f32 %v1916_v5, %v810_v8 }
  0x7a   : > { %v813_v10 = vsel %vm812_vm1, %v1916_v5, %v811_v9 }
  0xdf   : > { %v803_v11 = vpop.xlane.xlu0 %802 }
  0xe0   : > { %v814_v12 = vmul.f32 %v813_v10, %v803_v11 }
  0xe2   : > { %v816_v13 = vsub.f32 %v796_v0, %v814_v12 }
  0xe4   : > { %v818_v14 = vmul.f32 %v816_v13, %v816_v13 }
  0xe6   : > { %v820_v15 = vsel %vm800_vm0, %v818_v14, 0.0 }
  0xe7   : > { %821 = vadd.xlane.f32.xlu1 %v820_v15  ;;  %v806_v16 = vpop.xlane.xlu0 %805 }
  0xe8   : > { %v815_v17 = vmul.f32 %v813_v10, %v806_v16 }
  0xea   : > { %v817_v18 = vsub.f32 %v797_v2, %v815_v17 }
  0xec   : > { %v819_v19 = vmul.f32 %v817_v18, %v817_v18 }
  0xee   : > { %v823_v20 = vsel %vm800_vm0, %v819_v19, 0.0 }
  0xef   : > { %824 = vadd.xlane.f32.xlu1 %v823_v20 }
 0x15a   : > { %v822_v21 = vpop.xlane.xlu1 %821 }
 0x15b   : > { %v826_v22 = vmul.f32 %v822_v21, %v813_v10 }
 0x15d   : > { %v828_v23 = vadd.f32 1e-12, %v826_v22 }
 0x15f   : > { %1917 = vrsqrt.f32 %v828_v23  ;;  %vm836_vm3 = vweird.f32 %v828_v23 }
 0x162   : > { %v825_v24 = vpop.xlane.xlu1 %824 }
 0x163   : > { %v827_v25 = vmul.f32 %v825_v24, %v813_v10 }
 0x165   : > { %v1918_v26 = vpop.eup %1917  ;;  %v829_v27 = vadd.f32 1e-12, %v827_v25 }
 0x166   : > { %v831_v28 = vmul.f32 %v1918_v26, %v828_v23  ;;  %vm837_vm2 = vweird.f32 %v1918_v26 }
 0x167   : > { %1919 = vrsqrt.f32 %v829_v27  ;;  %vm838_vm4 = vmor %vm836_vm3, %vm837_vm2  ;;  %vm846_vm6 = vweird.f32 %v829_v27 }
 0x168   : > { %v832_v29 = vmul.f32 %v1918_v26, %v831_v28 }
 0x16a   : > { %v833_v30 = vmul.f32 0.5, %v832_v29 }
 0x16c   : > { %v834_v31 = vsub.f32 1.5, %v833_v30 }
 0x16d   : > { %v1920_v32 = vpop.eup %1919 }
 0x16e   : > { %v835_v33 = vmul.f32 %v1918_v26, %v834_v31  ;;  %v841_v34 = vmul.f32 %v1920_v32, %v829_v27  ;;  %vm847_vm5 = vweird.f32 %v1920_v32 }
 0x16f   : > { %vm848_vm7 = vmor %vm846_vm6, %vm847_vm5 }
 0x170   : > { %v839_v36 = vsel %vm838_vm4, %v1918_v26, %v835_v33  ;;  %v842_v37 = vmul.f32 %v1920_v32, %v841_v34 }
 0x171   : > { %v850_v39 = vmul.f32 %v839_v36, %v816_v13 }
 0x172   : > { %v843_v40 = vmul.f32 0.5, %v842_v37 }
 0x173   : > { %v855_v41 = vmul.f32 %v1913_v35, %v850_v39 }
 0x174   : > { %v844_v42 = vsub.f32 1.5, %v843_v40 }
 0x175   : > { %v860_v43 = vadd.f32 %v1914_v38, %v855_v41 }
 0x176   : > { %v845_v44 = vmul.f32 %v1920_v32, %v844_v42 }
 0x177   : > { %862 = vst.msk [vmem:[#allocation2] sm:$0xff] %vm800_vm0, %v860_v43 }
 0x178   : > { %v849_v45 = vsel %vm848_vm7, %v1920_v32, %v845_v44 }
 0x179   : > { %v851_v46 = vmul.f32 %v849_v45, %v817_v18 }
 0x17b   : > { %v856_v47 = vmul.f32 %v1913_v35, %v851_v46 }
 0x17d   : > { %v861_v48 = vadd.f32 %v1914_v38, %v856_v47 }
 0x17f   : > { %863 = vst.msk [vmem:[#allocation2 + $0x8] sm:$0xff] %vm800_vm0, %v861_v48 }
 0x180 PF: > { %v1795_v49 = vld [vmem:[%s2473_s18 + $0x8] sm:$0xff]  ;;  %v1794_v50 = vld [vmem:[%s2473_s18] sm:$0xff]  ;;  %vm887_vm8 = vcmask 261120   ;;  %s2731_s12 = scalar_lea.vmem %s2675_s4, %s2463_s23  ;;  %vm905_vm9 = vcmask 785408   ;;  %s2536_s18 = smov 0  }
 0x181   : > { %897 = vmatpush.bf16.msra.mxu0 %v1795_v49  ;;  %v2524_v51 = vld [vmem:[#allocation2] sm:$0xff] }
 0x182   : > { %v1921_v54 = vld [vmem:[%s2731_s12] ss:$0 sm:$0xff] }
 0x185   : > { %898 = vmatpush.bf16.msra.mxu0 %v1794_v50 }
 0x186   : > { %v2526_v52 = vld [vmem:[#allocation2 + $0x8] sm:$0xff] }
 0x187   : > { %v866_v53 = vpack.c.bf16 %v2526_v52, %v2524_v51 }
 0x189   : > { %1739 = vmatmul.msk.bf16.vlgmr.msra.gmra.mxu0 %vm887_vm8, %v866_v53 }
 0x206   : > { %v900_v55 = vpop.f32.mrf.mxu0 }
 0x207   : > { %v901_v56 = vadd.f32 %v1921_v54, %v900_v55 }
 0x209   : > { %906 = vst.msk [vmem:[#allocation4] sm:$0xff] %vm905_vm9, %v901_v56 }
 0x20e   : > { %v902_v57 = vpop.f32.mrf.mxu0 }
 0x20f   : > { %v903_v58 = vadd.f32 %v1921_v54, %v902_v57 }
 0x211   : > { %907 = vst.msk [vmem:[#allocation4 + $0x8] sm:$0xff] %vm905_vm9, %v903_v58 }
 0x212 LB: >> { %s1740_s20 = sshll.u32 %s2198_s18, 3  ;;  %s2206_s21 = smov 96   ;;  %vm923_vm10 = vcmask 64512   ;;  %vm960_vm11 = vcmask 1043456   ;;  %vm1159_vm12 = vcmask 130048   ;;  %vm1161_vm13 = vcmask 195584   ;;  %s2198_s18 = sphi %s2536_s18, %s913_s18  }
 0x213   : >> { %s915_s19 = scalar_lea.vmem [#allocation4], %s1740_s20  ;;  %s2207_s11 = smov 88  }
 0x214   : >> { %s2208_s0 = smov 120   ;;  %s2209_s27 = smov 64  }
 0x215   : >> { %s2210_s22 = smov 80   ;;  %s2211_s2 = smov 72  }
 0x216   : >> { %s2212_s15 = smov 112   ;;  %s2213_s3 = smov 104  }
 0x217   : >> { %s2214_s5 = smov 56   ;;  %s2215_s29 = smov 40  }
 0x218   : >> { %v916_v59 = vld [vmem:[%s915_s19] sm:$0xff]  ;;  %s2216_s30 = smov 48   ;;  %s2217_s7 = smov 8  }
 0x219   : >> { %v2544_v60 = vpack.c.bf16 %v916_v59, %v916_v59  ;;  %v917_v63 = vmul.f32 0.35355338, %v916_v59  ;;  %s2218_s12 = smov 16   ;;  %s2219_s19 = smov 24  }
 0x21a   : >> { %s913_s18 = sadd.s32 1, %s2198_s18  }
 0x21b   : >> { %921 = vrot.lane.b32.xlu0 %v2544_v60, %s2206_s21  ;;  %980 = vrot.lane.b32.xlu1 %v2544_v60, %s2207_s11  ;;  %v918_v0 = vpack.c.bf16 %v917_v63, %v917_v63  ;;  %s1163_s21 = scalar_lea.vmem [#allocation3], %s1740_s20  ;;  %p910_p1 = scmp.ge.s32.totalorder %s913_s18, 2  }
 0x21c   : > { %s2733_s18 = scalar_lea.vmem (%p910_p1), %s2679_s8, %s2463_s23  ;;  %vm1363_vm5 = vcmask (%p910_p1), 523264   ;;  %p1784_p4 = scmp.ne.s32.totalorder (%p910_p1), %s2332_s28, 1 }
 0x21d   : >> { %978 = vrot.lane.b32.xlu2 %v918_v0, %s2208_s0  ;;  %s2732_s0 = scalar_lea.vmem (%p910_p1), %s2677_s6, %s2463_s23 }
 0x225   : >> { %955 = vrot.lane.b32.xlu2 %v2544_v60, %s2209_s27 }
 0x22d   : >> { %1036 = vrot.lane.b32.xlu2 %v2544_v60, %s2210_s22 }
 0x235   : >> { %1092 = vrot.lane.b32.xlu2 %v2544_v60, %s2211_s2 }
 0x23d   : >> { %1034 = vrot.lane.b32.xlu2 %v918_v0, %s2212_s15 }
 0x245   : >> { %1090 = vrot.lane.b32.xlu2 %v918_v0, %s2213_s3 }
 0x277   : >> { %v979_v3 = vpop.permute.xlu2 %978 }
 0x27f   : >> { %v956_v7 = vpop.permute.xlu2 %955 }
 0x280   : >> { %v962_v12 = vsel %vm960_vm11, %v956_v7, 0 }
 0x281   : >> { %971 = vmatpush.bf16.msra.mxu1 %v962_v12 }
 0x287   : >> { %v1037_v8 = vpop.permute.xlu2 %1036 }
 0x288   : >> { %v1042_v10 = vsel %vm923_vm10, %v1037_v8, 0 }
 0x289   : >> { %1051 = vmatpush.bf16.xpose.msrb.mxu1 %v1042_v10 }
 0x28d   : >> { %v922_v61 = vpop.permute.xlu0 %921  ;;  %v981_v1 = vpop.permute.xlu1 %980 }
 0x28e   : >> { %v928_v62 = vsel %vm923_vm10, %v922_v61, 0  ;;  %v986_v2 = vsel %vm923_vm10, %v981_v1, 0 }
 0x28f   : >> { %937 = vmatpush.bf16.xpose.msra.mxu0 %v928_v62  ;;  %995 = vmatpush.bf16.xpose.msra.mxu2 %v986_v2  ;;  %v1093_v9 = vpop.permute.xlu2 %1092 }
 0x290   : >> { %v1098_v11 = vsel %vm923_vm10, %v1093_v9, 0 }
 0x296   : >> { %1741 = vmatmul.msk.bf16.vlgmr.msra.gmra.mxu0 %vm923_vm10, %v918_v0  ;;  %1743 = vmatmul.msk.bf16.vlgmr.msra.gmra.mxu2 %vm923_vm10, %v979_v3 }
 0x297   : >> { %1107 = vmatpush.bf16.xpose.msrb.mxu0 %v1098_v11  ;;  %v1035_v13 = vpop.permute.xlu2 %1034 }
 0x29f   : >> { %v1091_v14 = vpop.permute.xlu2 %1090 }
 0x2a6   : >> { %1747 = vmatmul.msk.bf16.vlgmr.msrb.gmra.mxu0 %vm923_vm10, %v1091_v14 }
 0x313   : >> { %v939_v4 = vpop.f32.mrf.mxu0 }
 0x314   : >> { %v943_v5 = vsel %vm923_vm10, %v939_v4, -inf }
 0x315   : >> { %944 = vmax.xlane.f32.xlu0 %v943_v5 }
 0x319   : >> { %v997_v15 = vpop.f32.mrf.mxu2 }
 0x31a   : >> { %v1001_v17 = vsel %vm923_vm10, %v997_v15, -inf }
 0x31b   : >> { %v941_v6 = vpop.f32.mrf.mxu0  ;;  %1002 = vmax.xlane.f32.xlu2 %v1001_v17 }
 0x321   : >> { %v999_v20 = vpop.f32.mrf.mxu2 }
 0x323   : >> { %v1109_v23 = vpop.f32.mrf.mxu0 }
 0x324   : >> { %v1113_v24 = vsel %vm923_vm10, %v1109_v23, -inf }
 0x32b   : >> { %v1111_v26 = vpop.f32.mrf.mxu0 }
 0x388   : >> { %v945_v16 = vpop.xlane.xlu0 %944 }
 0x389   : >> { %v946_v18 = vsub.f32 %v939_v4, %v945_v16 }
 0x38b   : >> { %v947_v19 = vmul.f32 1.442695, %v946_v18  ;;  %v1797_v18 = vld [vmem:[%s2478_s17 + $0x8] sm:$0xff] (%p910_p1) }
 0x38c   : > { %1197 = vmatpush.bf16.msra.mxu0 (%p910_p1), %v1797_v18  ;;  %v1801_v18 = vld [vmem:[%s2505_s26 + $0x8] sm:$0xff] (%p910_p1) }
 0x38d   : >> { %1922 = vpow2.f32 %v947_v19  ;;  %v1796_v19 = vld [vmem:[%s2478_s17] sm:$0xff] (%p910_p1) }
 0x38e   : >> { %v1003_v31 = vpop.xlane.xlu2 %1002 }
 0x38f   : >> { %v1004_v32 = vsub.f32 %v997_v15, %v1003_v31 }
 0x390   : > { %1198 = vmatpush.bf16.msra.mxu0 (%p910_p1), %v1796_v19  ;;  %v1941_v19 = vld [vmem:[%s779_s16] ss:$0 sm:$0xff] (%p910_p1) }
 0x391   : >> { %v1005_v34 = vmul.f32 1.442695, %v1004_v32  ;;  %v2220_v32 = vmov (%p910_p1), 32.0  }
 0x393   : >> { %v1923_v21 = vpop.eup %1922 }
 0x394   : >> { %v949_v22 = vsel %vm923_vm10, %v1923_v21, 0.0 }
 0x395   : >> { %950 = vadd.xlane.f32.xlu1 %v949_v22 }
 0x39d   : >> { %1114 = vmax.xlane.f32.xlu1 %v1113_v24 }
 0x3b6   : >> { %1013 = vrot.lane.b32.xlu1 %v2544_v60, %s2214_s5 }
 0x3be   : >> { %1125 = vrot.lane.b32.xlu1 %v2544_v60, %s2215_s29 }
 0x408   : >> { %v951_v25 = vpop.xlane.xlu1 %950 }
 0x409   : >> { %1924 = vrcp.f32 %v951_v25 }
 0x40a   : >> { %1926 = vpow2.f32 %v1005_v34 }
 0x40f   : >> { %v1925_v27 = vpop.eup %1924 }
 0x410   : >> { %v953_v28 = vmul.f32 %v1925_v27, %v1923_v21  ;;  %v1115_v35 = vpop.xlane.xlu1 %1114  ;;  %v1927_v40 = vpop.eup %1926 }
 0x411   : >> { %v1116_v36 = vsub.f32 %v1109_v23, %v1115_v35  ;;  %v1007_v42 = vsel %vm923_vm10, %v1927_v40, 0.0  ;;  %v1938_v23 = vld [vmem:[%s2732_s0] ss:$0 sm:$0xff] (%p910_p1) }
 0x412   : >> { %v954_v29 = vpack.c.bf16 %v953_v28, %v953_v28 }
 0x413   : >> { %v1117_v39 = vmul.f32 1.442695, %v1116_v36 }
 0x414   : >> { %1742 = vmatmul.msk.bf16.vlgmr.msra.gmra.mxu1 %vm923_vm10, %v954_v29 }
 0x415   : >> { %1928 = vpow2.f32 %v1117_v39 }
 0x41b   : >> { %v1929_v43 = vpop.eup %1928 }
 0x41c   : >> { %v1119_v44 = vsel %vm923_vm10, %v1929_v43, 0.0 }
 0x424   : >> { %1745 = vmatmul.msk.bf16.vlgmr.msrb.gmra.mxu1 %vm923_vm10, %v1035_v13 }
 0x428   : >> { %v1014_v45 = vpop.permute.xlu1 %1013 }
 0x429   : >> { %v1019_v46 = vsel %vm960_vm11, %v1014_v45, 0 }
 0x42a   : >> { %1028 = vmatpush.bf16.msra.mxu3 %v1019_v46 }
 0x430   : >> { %v1126_v47 = vpop.permute.xlu1 %1125 }
 0x431   : >> { %v1131_v48 = vsel %vm960_vm11, %v1126_v47, 0  ;;  %v1799_v47 = vld [vmem:[%s2491_s24 + $0x8] sm:$0xff] (%p910_p1) }
 0x432   : >> { %1140 = vmatpush.bf16.msrb.mxu2 %v1131_v48  ;;  %1300 = vmatpush.bf16.msra.mxu1 (%p910_p1), %v1799_v47  ;;  %v1798_v48 = vld [vmem:[%s2491_s24] sm:$0xff] (%p910_p1) }
 0x436   : > { %1301 = vmatpush.bf16.msra.mxu1 (%p910_p1), %v1798_v48 }
 0x491   : >> { %v2567_v30 = vpop.f32.mrf.mxu1 }
 0x499   : >> { %v975_v33 = vpop.f32.mrf.mxu1 }
 0x4a1   : >> { %v1053_v37 = vpop.f32.mrf.mxu1 }
 0x4a2   : >> { %v1057_v38 = vsel %vm923_vm10, %v1053_v37, -inf }
 0x4a3   : >> { %1058 = vmax.xlane.f32.xlu0 %v1057_v38 }
 0x4a9   : >> { %v1055_v41 = vpop.f32.mrf.mxu1 }
 0x4ab   : >> { %1008 = vadd.xlane.f32.xlu0 %v1007_v42 }
 0x4b3   : >> { %1120 = vadd.xlane.f32.xlu0 %v1119_v44 }
 0x516   : >> { %v1059_v49 = vpop.xlane.xlu0 %1058 }
 0x517   : >> { %v1060_v50 = vsub.f32 %v1053_v37, %v1059_v49 }
 0x519   : >> { %v1061_v53 = vmul.f32 1.442695, %v1060_v50 }
 0x51b   : >> { %1930 = vpow2.f32 %v1061_v53 }
 0x51e   : >> { %v1009_v54 = vpop.xlane.xlu0 %1008 }
 0x51f   : >> { %1932 = vrcp.f32 %v1009_v54 }
 0x521   : >> { %v1931_v55 = vpop.eup %1930 }
 0x522   : >> { %v1063_v56 = vsel %vm923_vm10, %v1931_v55, 0.0 }
 0x523   : >> { %1064 = vadd.xlane.f32.xlu0 %v1063_v56 }
 0x525   : >> { %v1933_v57 = vpop.eup %1932 }
 0x526   : >> { %v1121_v58 = vpop.xlane.xlu0 %1120  ;;  %v1011_v59 = vmul.f32 %v1933_v57, %v1927_v40 }
 0x527   : >> { %1934 = vrcp.f32 %v1121_v58 }
 0x528   : >> { %v1012_v61 = vpack.c.bf16 %v1011_v59, %v1011_v59 }
 0x52a   : >> { %1744 = vmatmul.msk.bf16.vlgmr.msra.gmra.mxu3 %vm923_vm10, %v1012_v61 }
 0x52d   : >> { %v1935_v62 = vpop.eup %1934 }
 0x52e   : >> { %v1123_v63 = vmul.f32 %v1935_v62, %v1929_v43 }
 0x530   : >> { %v1124_v0 = vpack.c.bf16 %v1123_v63, %v1123_v63 }
 0x532   : >> { %1748 = vmatmul.msk.bf16.vlgmr.msrb.gmra.mxu2 %vm923_vm10, %v1124_v0 }
 0x537   : >> { %1069 = vrot.lane.b32.xlu0 %v2544_v60, %s2216_s30 }
 0x596   : >> { %v1065_v1 = vpop.xlane.xlu0 %1064 }
 0x597   : >> { %1936 = vrcp.f32 %v1065_v1 }
 0x598   : > { %1945 = vrcp.f32 (%p910_p1), %v2220_v32 }
 0x59d   : >> { %v1937_v2 = vpop.eup %1936 }
 0x59e   : >> { %v1067_v3 = vmul.f32 %v1937_v2, %v1931_v55  ;;  %v1946_v33 = vpop.eup (%p910_p1), %1945 }
 0x59f   : > { %v1216_v34 = vmul.f32 (%p910_p1), 32.0, %v1946_v33  ;;  %vm1220_vm14 = vweird.f32 (%p910_p1), %v1946_v33 }
 0x5a0   : >> { %v1068_v6 = vpack.c.bf16 %v1067_v3, %v1067_v3 }
 0x5a1   : > { %v1217_v35 = vsub.f32 (%p910_p1), 1.0, %v1216_v34 }
 0x5a3   : > { %v1218_v36 = vmul.f32 (%p910_p1), %v1946_v33, %v1217_v35 }
 0x5a5   : > { %v1219_v37 = vadd.f32 (%p910_p1), %v1946_v33, %v1218_v36 }
 0x5a9   : >> { %v1070_v4 = vpop.permute.xlu0 %1069 }
 0x5aa   : >> { %v1075_v5 = vsel %vm960_vm11, %v1070_v4, 0 }
 0x5ab   : >> { %1084 = vmatpush.bf16.msrb.mxu3 %v1075_v5 }
 0x5ad   : >> { %v1030_v7 = vpop.f32.mrf.mxu3 }
 0x5ae   : >> { %1746 = vmatmul.msk.bf16.vlgmr.msrb.gmra.mxu3 %vm923_vm10, %v1068_v6  ;;  %1147 = vrot.lane.b32.xlu2 %v1030_v7, %s2217_s7  ;;  %v1939_v7 = vld [vmem:[%s2449_s14] ss:$0 sm:$0xff] (%p910_p1) }
 0x5b5   : >> { %v1032_v8 = vpop.f32.mrf.mxu3  ;;  %v1142_v9 = vpop.f32.mrf.mxu2 }
 0x5bd   : >> { %v1144_v10 = vpop.f32.mrf.mxu2 }
 0x608   : >> { %v1148_v13 = vpop.permute.xlu2 %1147 }
 0x609   : >> { %v1158_v14 = vsel %vm923_vm10, %v2567_v30, %v1148_v13 }
 0x631   : >> { %v1086_v11 = vpop.f32.mrf.mxu3 }
 0x632   : >> { %1151 = vrot.lane.b32.xlu1 %v1086_v11, %s2218_s12 }
 0x639   : >> { %v1088_v60 = vpop.f32.mrf.mxu3 }
 0x63a   : >> { %1155 = vrot.lane.b32.xlu1 %v1142_v9, %s2219_s19  ;;  %v1940_v60 = vld [vmem:[%s2733_s18] ss:$0 sm:$0xff] (%p910_p1) }
 0x6a4   : >> { %v1152_v12 = vpop.permute.xlu1 %1151 }
 0x6a5   : >> { %v1160_v15 = vsel %vm1159_vm12, %v1158_v14, %v1152_v12 }
 0x6aa   : > { %912 = sbr.rel (!%p910_p1) target bundleno = 530 (0x212), region = 194 }
 0x6ac   : >> { %v1156_v16 = vpop.permute.xlu1 %1155 }
 0x6ad   : >> { %v1162_v17 = vsel %vm1161_vm13, %v1160_v15, %v1156_v16  ;;  %v1803_v16 = vld [vmem:[%s2505_s26 + $0x18] sm:$0xff] (%p910_p1) }
 0x6ae   : >> { %1164 = vst.msk [vmem:[%s1163_s21] sm:$0xff] %vm887_vm8, %v1162_v17  ;;  %1371 = vmatpush.bf16.msra.mxu2 (%p910_p1), %v1803_v16  ;;  %v1802_v17 = vld [vmem:[%s2505_s26 + $0x10] sm:$0xff] (%p910_p1) }
 0x6b2   : > { %1372 = vmatpush.bf16.msra.mxu2 %v1802_v17 }
 0x6b5   : > { %v1165_v20 = vld [vmem:[#allocation3] sm:$0xff]  ;;  %v1166_v21 = vld [vmem:[#allocation3 + $0x8] sm:$0xff] }
 0x6b6   : > { %v1167_v22 = vpack.c.bf16 %v1166_v21, %v1165_v20  ;;  %1373 = vmatpush.bf16.msra.mxu2 %v1801_v18  ;;  %v1800_v20 = vld [vmem:[%s2505_s26] sm:$0xff] }
 0x6b8   : > { %1757 = vmatmul.msk.bf16.vlgmr.msra.gmra.mxu0 %vm887_vm8, %v1167_v22 }
 0x6ba   : > { %1374 = vmatpush.bf16.msra.mxu2 %v1800_v20 }
 0x735   : > { %v1200_v24 = vpop.f32.mrf.mxu0 }
 0x736   : > { %v1201_v25 = vadd.f32 %v1938_v23, %v1200_v24 }
 0x738   : > { %v1205_v26 = vadd.f32 %v1201_v25, %v2524_v51  ;;  %v2600_v51 = vsel %vm1220_vm14, %v1946_v33, %v1219_v37 }
 0x73a   : > { %v1209_v27 = vsel %vm887_vm8, %v1205_v26, 0.0 }
 0x73b   : > { %1210 = vadd.xlane.f32.xlu0 %v1209_v27 }
 0x73d   : > { %v1202_v28 = vpop.f32.mrf.mxu0 }
 0x73e   : > { %v1203_v29 = vadd.f32 %v1938_v23, %v1202_v28 }
 0x740   : > { %v1206_v30 = vadd.f32 %v1203_v29, %v2526_v52 }
 0x742   : > { %v1212_v31 = vsel %vm887_vm8, %v1206_v30, 0.0 }
 0x743   : > { %1213 = vadd.xlane.f32.xlu0 %v1212_v31 }
 0x7ae   : > { %v1211_v38 = vpop.xlane.xlu0 %1210 }
 0x7af   : > { %v1222_v39 = vmul.f32 %v2600_v51, %v1211_v38 }
 0x7b1   : > { %v1224_v40 = vsub.f32 %v1205_v26, %v1222_v39 }
 0x7b3   : > { %v1226_v52 = vmul.f32 %v1224_v40, %v1224_v40 }
 0x7b5   : > { %v1228_v41 = vsel %vm887_vm8, %v1226_v52, 0.0 }
 0x7b6   : > { %1229 = vadd.xlane.f32.xlu1 %v1228_v41  ;;  %v1214_v42 = vpop.xlane.xlu0 %1213 }
 0x7b7   : > { %v1223_v43 = vmul.f32 %v2600_v51, %v1214_v42 }
 0x7b9   : > { %v1225_v44 = vsub.f32 %v1206_v30, %v1223_v43  ;;  %v1942_v43 = vld [vmem:[%s787_s13] ss:$0 sm:$0xff] }
 0x7bb   : > { %v1227_v45 = vmul.f32 %v1225_v44, %v1225_v44 }
 0x7bd   : > { %v1231_v46 = vsel %vm887_vm8, %v1227_v45, 0.0 }
 0x7be   : > { %1232 = vadd.xlane.f32.xlu1 %v1231_v46 }
 0x829   : > { %v1230_v49 = vpop.xlane.xlu1 %1229 }
 0x82a   : > { %v1234_v50 = vmul.f32 %v1230_v49, %v2600_v51 }
 0x82c   : > { %v1236_v53 = vadd.f32 1e-12, %v1234_v50 }
 0x82e   : > { %1947 = vrsqrt.f32 %v1236_v53  ;;  %vm1244_vm0 = vweird.f32 %v1236_v53 }
 0x831   : > { %v1233_v54 = vpop.xlane.xlu1 %1232 }
 0x832   : > { %v1235_v55 = vmul.f32 %v1233_v54, %v2600_v51 }
 0x834   : > { %v1948_v56 = vpop.eup %1947  ;;  %v1237_v57 = vadd.f32 1e-12, %v1235_v55 }
 0x835   : > { %v1239_v58 = vmul.f32 %v1948_v56, %v1236_v53  ;;  %vm1245_vm15 = vweird.f32 %v1948_v56 }
 0x836   : > { %1949 = vrsqrt.f32 %v1237_v57  ;;  %vm1246_vm1 = vmor %vm1244_vm0, %vm1245_vm15  ;;  %vm1254_vm3 = vweird.f32 %v1237_v57 }
 0x837   : > { %v1240_v59 = vmul.f32 %v1948_v56, %v1239_v58 }
 0x839   : > { %v1241_v61 = vmul.f32 0.5, %v1240_v59 }
 0x83b   : > { %v1242_v62 = vsub.f32 1.5, %v1241_v61 }
 0x83c   : > { %v1950_v63 = vpop.eup %1949 }
 0x83d   : > { %v1243_v0 = vmul.f32 %v1948_v56, %v1242_v62  ;;  %v1249_v1 = vmul.f32 %v1950_v63, %v1237_v57  ;;  %vm1255_vm2 = vweird.f32 %v1950_v63 }
 0x83e   : > { %vm1256_vm4 = vmor %vm1254_vm3, %vm1255_vm2 }
 0x83f   : > { %v1250_v2 = vmul.f32 %v1950_v63, %v1249_v1  ;;  %v1247_v4 = vsel %vm1246_vm1, %v1948_v56, %v1243_v0 }
 0x840   : > { %v1258_v6 = vmul.f32 %v1247_v4, %v1224_v40 }
 0x841   : > { %v1251_v3 = vmul.f32 0.5, %v1250_v2 }
 0x842   : > { %v1263_v11 = vmul.f32 %v1939_v7, %v1258_v6 }
 0x843   : > { %v1252_v5 = vsub.f32 1.5, %v1251_v3 }
 0x844   : > { %v1268_v13 = vadd.f32 %v1940_v60, %v1263_v11 }
 0x845   : > { %v1253_v8 = vmul.f32 %v1950_v63, %v1252_v5 }
 0x847   : > { %v1257_v9 = vsel %vm1256_vm4, %v1950_v63, %v1253_v8 }
 0x848   : > { %v1259_v10 = vmul.f32 %v1257_v9, %v1225_v44 }
 0x84a   : > { %v1264_v12 = vmul.f32 %v1939_v7, %v1259_v10 }
 0x84c   : > { %v1269_v14 = vadd.f32 %v1940_v60, %v1264_v12 }
 0x84e   : > { %v1270_v15 = vpack.c.bf16 %v1269_v14, %v1268_v13 }
 0x850   : > { %1766 = vmatmul.msk.bf16.vlgmr.msra.gmra.mxu1 %vm887_vm8, %v1270_v15 }
 0x8cd   : > { %v1303_v21 = vpop.f32.mrf.mxu1 }
 0x8ce   : > { %v1304_v22 = vadd.f32 %v1941_v19, %v1303_v21 }
 0x8d0   : > { %v1308_v23 = vmul.f32 %v1304_v22, %v1304_v22 }
 0x8d2   : > { %v1310_v24 = vmul.f32 %v1308_v23, %v1304_v22 }
 0x8d4   : > { %v1312_v25 = vmul.f32 0.044715, %v1310_v24 }
 0x8d5   : > { %v1305_v26 = vpop.f32.mrf.mxu1 }
 0x8d6   : > { %v1314_v27 = vadd.f32 %v1312_v25, %v1304_v22  ;;  %v1306_v28 = vadd.f32 %v1941_v19, %v1305_v26 }
 0x8d8   : > { %v1316_v29 = vmul.f32 0.7978846, %v1314_v27  ;;  %v1309_v30 = vmul.f32 %v1306_v28, %v1306_v28 }
 0x8da   : > { %v1311_v31 = vmul.f32 %v1309_v30, %v1306_v28  ;;  %1951 = vtanh.f32 %v1316_v29 }
 0x8dc   : > { %v1313_v32 = vmul.f32 0.044715, %v1311_v31 }
 0x8de   : > { %v1315_v33 = vadd.f32 %v1313_v32, %v1306_v28 }
 0x8e0   : > { %v1317_v34 = vmul.f32 0.7978846, %v1315_v33  ;;  %v1952_v35 = vpop.eup %1951 }
 0x8e1   : > { %v1320_v36 = vadd.f32 1.0, %v1952_v35 }
 0x8e2   : > { %1953 = vtanh.f32 %v1317_v34 }
 0x8e3   : > { %v1322_v39 = vmul.f32 0.5, %v1320_v36 }
 0x8e5   : > { %v1324_v52 = vmul.f32 %v1322_v39, %v1304_v22 }
 0x8e8   : > { %v1954_v37 = vpop.eup %1953 }
 0x8e9   : > { %v1321_v38 = vadd.f32 1.0, %v1954_v37 }
 0x8eb   : > { %v1323_v40 = vmul.f32 0.5, %v1321_v38 }
 0x8ed   : > { %v1325_v41 = vmul.f32 %v1323_v40, %v1306_v28 }
 0x8ef   : > { %v1326_v42 = vpack.c.bf16 %v1325_v41, %v1324_v52 }
 0x8f1   : > { %1783 = vmatmul.msk.bf16.vlgmr.msra.gmra.mxu2 %vm1363_vm5, %v1326_v42 }
 0x974   : > { %v1376_v44 = vpop.f32.mrf.mxu2 }
 0x975   : > { %v1377_v45 = vadd.f32 %v1942_v43, %v1376_v44 }
 0x977   : > { %v1381_v46 = vadd.f32 %v1377_v45, %v1268_v13 }
 0x979   : > { %v1385_v47 = vsel %vm887_vm8, %v1381_v46, 0.0 }
 0x97a   : > { %1386 = vadd.xlane.f32.xlu2 %v1385_v47 }
 0x97c   : > { %v1378_v48 = vpop.f32.mrf.mxu2 }
 0x97d   : > { %v1379_v49 = vadd.f32 %v1942_v43, %v1378_v48 }
 0x97f   : > { %v1382_v50 = vadd.f32 %v1379_v49, %v1269_v14  ;;  %v1943_v14 = vld [vmem:[%s2455_s1] ss:$0 sm:$0xff] }
 0x981   : > { %v1388_v53 = vsel %vm887_vm8, %v1382_v50, 0.0 }
 0x982   : > { %1389 = vadd.xlane.f32.xlu2 %v1388_v53 }
 0x9ed   : > { %v1387_v54 = vpop.xlane.xlu2 %1386 }
 0x9ee   : > { %v1391_v55 = vmul.f32 %v1387_v54, %v2600_v51 }
 0x9f0   : > { %v1393_v56 = vsub.f32 %v1381_v46, %v1391_v55 }
 0x9f2   : > { %v1395_v57 = vmul.f32 %v1393_v56, %v1393_v56 }
 0x9f4   : > { %v1397_v58 = vsel %vm887_vm8, %v1395_v57, 0.0 }
 0x9f5   : > { %1398 = vadd.xlane.f32.xlu0 %v1397_v58  ;;  %v1390_v59 = vpop.xlane.xlu2 %1389 }
 0x9f6   : > { %v1392_v61 = vmul.f32 %v1390_v59, %v2600_v51 }
 0x9f8   : > { %v1394_v62 = vsub.f32 %v1382_v50, %v1392_v61 }
 0x9fa   : > { %v1396_v63 = vmul.f32 %v1394_v62, %v1394_v62 }
 0x9fc   : > { %v1400_v0 = vsel %vm887_vm8, %v1396_v63, 0.0 }
 0x9fd   : > { %1401 = vadd.xlane.f32.xlu1 %v1400_v0 }
 0xa68   : > { %v1399_v1 = vpop.xlane.xlu0 %1398 }
 0xa69   : > { %v1403_v2 = vmul.f32 %v1399_v1, %v2600_v51 }
 0xa6b   : > { %v1405_v3 = vadd.f32 1e-12, %v1403_v2 }
 0xa6d   : > { %1955 = vrsqrt.f32 %v1405_v3  ;;  %vm1413_vm7 = vweird.f32 %v1405_v3 }
 0xa70   : > { %v1402_v4 = vpop.xlane.xlu1 %1401 }
 0xa71   : > { %v1404_v5 = vmul.f32 %v1402_v4, %v2600_v51  ;;  %v1944_v51 = vld [vmem:[%s790_s10] ss:$0 sm:$0xff]  ;;  %s2737_s10 = sld [smem:[#allocation34_spill]] (!%p1784_p4) }
 0xa73   : > { %v1956_v6 = vpop.eup %1955  ;;  %v1406_v7 = vadd.f32 1e-12, %v1404_v5 }
 0xa74   : > { %v1408_v8 = vmul.f32 %v1956_v6, %v1405_v3  ;;  %vm1414_vm6 = vweird.f32 %v1956_v6 }
 0xa75   : > { %1957 = vrsqrt.f32 %v1406_v7  ;;  %vm1415_vm9 = vmor %vm1413_vm7, %vm1414_vm6  ;;  %vm1423_vm11 = vweird.f32 %v1406_v7 }
 0xa76   : > { %v1409_v9 = vmul.f32 %v1956_v6, %v1408_v8 }
 0xa78   : > { %v1410_v10 = vmul.f32 0.5, %v1409_v9 }
 0xa7a   : > { %v1411_v11 = vsub.f32 1.5, %v1410_v10 }
 0xa7b   : > { %v1958_v60 = vpop.eup %1957 }
 0xa7c   : > { %v1412_v12 = vmul.f32 %v1956_v6, %v1411_v11  ;;  %v1418_v13 = vmul.f32 %v1958_v60, %v1406_v7  ;;  %vm1424_vm10 = vweird.f32 %v1958_v60 }
 0xa7d   : > { %vm1425_vm12 = vmor %vm1423_vm11, %vm1424_vm10 }
 0xa7e   : > { %v1416_v15 = vsel %vm1415_vm9, %v1956_v6, %v1412_v12  ;;  %v1419_v16 = vmul.f32 %v1958_v60, %v1418_v13 }
 0xa7f   : > { %v1427_v17 = vmul.f32 %v1416_v15, %v1393_v56 }
 0xa80   : > { %v1420_v18 = vmul.f32 0.5, %v1419_v16 }
 0xa81   : > { %v1432_v19 = vmul.f32 %v1943_v14, %v1427_v17 }
 0xa82   : > { %v1421_v20 = vsub.f32 1.5, %v1420_v18 }
 0xa83   : > { %v1437_v21 = vadd.f32 %v1944_v51, %v1432_v19 }
 0xa84   : > { %v1422_v22 = vmul.f32 %v1958_v60, %v1421_v20 }
 0xa85   : > { %1439 = vst.msk [vmem:[#allocation2] sm:$0xff] %vm887_vm8, %v1437_v21 }
 0xa86   : > { %v1426_v23 = vsel %vm1425_vm12, %v1958_v60, %v1422_v22 }
 0xa87   : > { %v1428_v24 = vmul.f32 %v1426_v23, %v1394_v62 }
 0xa89   : > { %v1433_v25 = vmul.f32 %v1943_v14, %v1428_v24  ;;  %1444 = sbr.rel (%p1784_p4) target bundleno = 2851 (0xb23), region = 123 }
 0xa8b   : > { %v1438_v26 = vadd.f32 %v1944_v51, %v1433_v25 }
 0xa8d   : > { %1440 = vst.msk [vmem:[#allocation2 + $0x8] sm:$0xff] %vm887_vm8, %v1438_v26 }
 0xa8e   : > { %v1473_v27 = vld [vmem:[#allocation12 + $0x18] sm:$0xff]  ;;  %v1472_v28 = vld [vmem:[#allocation12 + $0x10] sm:$0xff]  ;;  %v1445_v29 = vsel %vm887_vm8, %v1437_v21, 0.0  ;;  %v1460_v30 = vsel %vm887_vm8, %v1438_v26, 0.0  ;;  %v2221_v32 = vmov 8.0   ;;  %v1471_v34 = vld [vmem:[#allocation12 + $0x8] sm:$0xff] }
 0xa8f   : > { %1493 = vmatpush.msra.mxu0 %v1473_v27  ;;  %v1446_v31 = vrot.slane %v1445_v29, 4  ;;  %1960 = vrcp.f32 %v2221_v32  ;;  %v1461_v33 = vrot.slane %v1460_v30, 4  ;;  %v1470_v37 = vld [vmem:[#allocation12] sm:$0xff]  ;;  %vm1468_vm14 = vcmask 1040384   ;;  %v1959_v56 = vld [vmem:[%s2737_s10] ss:$0 sm:$0xff] }
 0xa91   : > { %1494 = vmatpush.msra.mxu0 %v1472_v28  ;;  %v1447_v35 = vadd.f32 %v1446_v31, %v1445_v29  ;;  %v1462_v36 = vadd.f32 %v1461_v33, %v1460_v30 }
 0xa93   : > { %1495 = vmatpush.msra.mxu0 %v1471_v34  ;;  %v1448_v38 = vrot.slane %v1447_v35, 2  ;;  %v1463_v39 = vrot.slane %v1462_v36, 2 }
 0xa95   : > { %v1961_v40 = vpop.eup %1960  ;;  %1496 = vmatpush.msra.mxu0 %v1470_v37  ;;  %v1449_v52 = vadd.f32 %v1448_v38, %v1447_v35  ;;  %v1464_v41 = vadd.f32 %v1463_v39, %v1462_v36 }
 0xa96   : > { %v1453_v42 = vmul.f32 8.0, %v1961_v40  ;;  %vm1457_vm13 = vweird.f32 %v1961_v40 }
 0xa97   : > { %v1450_v43 = vrot.slane %v1449_v52, 1  ;;  %v1465_v44 = vrot.slane %v1464_v41, 1 }
 0xa98   : > { %v1454_v45 = vsub.f32 1.0, %v1453_v42 }
 0xa99   : > { %v1451_v47 = vadd.f32 %v1450_v43, %v1449_v52  ;;  %v1466_v48 = vadd.f32 %v1465_v44, %v1464_v41 }
 0xa9a   : > { %v1455_v46 = vmul.f32 %v1961_v40, %v1454_v45 }
 0xa9c   : > { %v1456_v49 = vadd.f32 %v1961_v40, %v1455_v46 }
 0xa9e   : > { %v1458_v50 = vsel %vm1457_vm13, %v1961_v40, %v1456_v49 }
 0xa9f   : > { %v1459_v53 = vmul.f32 %v1458_v50, %v1451_v47  ;;  %v1467_v54 = vmul.f32 %v1466_v48, %v1458_v50 }
 0xaa1   : > { %v1469_v55 = vsel %vm1468_vm14, %v1459_v53, %v1467_v54 }
 0xaa2   : > { %1785 = vmatmul.msk.f32.vlgmr.msra.gmra.mxu0 %vm887_vm8, %v1469_v55 }
 0xb1f   : > { %v1498_v57 = vpop.f32.mrf.mxu0 }
 0xb20   : > { %v1499_v58 = vadd.f32 %v1959_v56, %v1498_v57 }
 0xb22   : > { %1501 = vst [vmem:[#allocation13] sm:$0x3] %v1499_v58 }
 0xb23 PF: > { %p1848_p5 = scmp.eq.s32.totalorder %s2332_s28, 1  ;;  %s2222_s5 = smov [#allocation13]  }
 0xb24   : > { %s1508_s29 = sshll.u32 %s2222_s5, 4  ;;  %s2738_s12 = sld [smem:[#allocation35_spill]]  ;;  %s1509_s29 = int_to_ptr.vmem [resolvable:$true] %s1508_s29 }
 0xb2a   : > { %s1510_s19 = sshll.u32 %s2738_s12, 4  ;;  %s1511_s19 = int_to_ptr.hbm [resolvable:$true] %s1510_s19 }
 0xb2b   : > { %1821 = dma.vmem_to_hbm [thread:$0]  (%p1848_p5), %s1509_s29, 32, %s1511_s19, [#allocation7]  }
 0xb2c   : > { %2177 = dma.done.wait (%p1848_p5), [#allocation7], 32  }
 0xb2d   : > { %2179 = vsyncadd (%p1848_p5), [#allocation7], 4294967264 }
 0xb2e PF: > { %s2739_s27 = sld [smem:[#allocation20_spill]]  ;;  %s2742_s24 = smov %s2186_s25 }
 0xb2f   : > { %s2740_s21 = sld [smem:[#allocation19_spill]] }
 0xb30   : > { %s2741_s26 = sld [smem:[#allocation21_spill]] }
 0xb34   : > { %p27_p0 = scmp.ge.s32.totalorder %s2739_s27, 4  }
 0xb35   : > { %s2743_s25 = smov %s2740_s21 }
 0xb36   :  { %29 = sbr.rel (!%p27_p0) target bundleno = 19 (0x13), region = 205 }
 0xb3b   :  { %1524 = vsyncpa [#allocation6], 1 }
 0xb3c   :  { %1526 = vsyncpa [#allocation6 + $0x1], 1 }
 0xb3d   :  { %1527 = vsyncpa [#allocation9], 1 }
 0xb3e   :  { %1528 = vsyncpa [#allocation7], 1 }
 0xb3f   :  { %1530 = vsyncpa [#allocation7 + $0x1], 1 }

</bundles_post_ra>
